<compile_context>
chip_gen: v7x
topology: tpu7x:2x2x1
jax: 0.10.0
libtpu: 0.0.40
codegen_flags: <defaults>
</compile_context>

<pallas_src>
import jax
import jax.numpy as jnp
from jax import lax
from jax.experimental import pallas as pl
from jax.experimental.pallas import tpu as pltpu


def _round_up(x, m):
    return (x + m - 1) // m * m


def _pad_to(a, shape):
    pads = [(0, t - s) for s, t in zip(a.shape, shape)]
    if all(p == (0, 0) for p in pads):
        return a
    return jnp.pad(a, pads)


def _vmem_limit_bytes():
    # Generation-aware scoped-VMEM limit: half of physical capacity, capped at
    # 64 MiB (v5e/v6e: 128 MiB phys -> 64 MiB; v7x: 64 MiB phys -> 32 MiB).
    cap = 64 * 1024 * 1024
    try:
        cap = int(getattr(pltpu.get_tpu_info(), "vmem_capacity_bytes", cap))
    except Exception:
        pass
    return int(min(64 * 1024 * 1024, max(32 * 1024 * 1024, cap // 2)))


def _auto_tile_e(E, sp, d, h, mat_isz, tok_isz, vmem_limit):
    # Double-buffered pipeline blocks per expression row...
    per_row_blocks = 2 * (sp * d * mat_isz       # x block (bf16)
                          + sp * 4               # mask block
                          + sp * h * tok_isz     # token-out block
                          + h * 4)               # combined-out block
    # ...plus single-buffered in-kernel intermediates (h3 f32, p*h3 temp,
    # x2d reshape copy, scores/softmax rows).
    per_row_tmp = sp * h * 8 + sp * d * mat_isz + 8 * sp
    per_row = per_row_blocks + per_row_tmp
    budget = vmem_limit // 2                     # headroom for weights + scratch
    t = max(8, min(int(budget // max(per_row, 1)) // 8 * 8, 512))
    if E >= 16:
        # Guarantee >=2 grid steps so the "parallel" axis can shard across
        # TensorCores on v7x.
        t = min(t, max(8, _round_up((E + 1) // 2, 8)))
    return min(t, _round_up(E, 8))


# ---------------------------------------------------------------------------
# Fused kernel: per-token projection + ReLU, masked attention pooling,
# combiner linear + ReLU, LayerNorm — all per expression tile.
# ---------------------------------------------------------------------------
def _encoder_combiner_kernel(x_ref, mask_ref, w_enc_ref, b_enc_ref, w_q_ref,
                             w_comb_ref, b_comb_ref, gamma_ref, beta_ref,
                             tok_out_ref, comb_out_ref):
    te, sp, d = x_ref.shape
    h = w_enc_ref.shape[1]

    # --- encoder: h = relu(x @ W_enc + b_enc), per token (MXU bf16 in / f32 acc)
    x2d = x_ref[...].reshape(te * sp, d)                        # layout-trivial (sp % 16 == 0)
    h2d = jnp.dot(x2d, w_enc_ref[...], preferred_element_type=jnp.float32)
    h2d = jnp.maximum(h2d + b_enc_ref[...], 0.0)                # [te*sp, h] f32
    h3 = h2d.reshape(te, sp, h)
    tok_out_ref[...] = h3.astype(tok_out_ref.dtype)             # bf16 store

    # --- combiner: masked attention pooling over the sequence ------------
    mask = mask_ref[...]                                        # [te, sp] (1/0)
    scores = jnp.sum(h3 * w_q_ref[...][None], axis=-1)          # [te, sp]
    scores = jnp.where(mask > 0, scores, jnp.float32(-1e30))
    m = jnp.max(scores, axis=-1, keepdims=True)
    p = jnp.exp(scores - m) * mask
    denom = jnp.maximum(jnp.sum(p, axis=-1, keepdims=True),
                        jnp.float32(1e-20))                     # safe for len==0
    p = p * pl.reciprocal(denom, approx=True)                   # EUP vrcp

    # TODO(synk): if a bundle dump shows VMEM/spill pressure at very large
    # tiles, chunk this pooling over `te` (or re-read tok_out_ref) to shorten
    # the f32 live range of h3; the auto-sizer already budgets for it.
    pooled = jnp.sum(p[:, :, None] * h3, axis=1)                # [te, h]

    out = jnp.dot(pooled.astype(w_comb_ref.dtype), w_comb_ref[...],
                  preferred_element_type=jnp.float32)
    out = jnp.maximum(out + b_comb_ref[...], 0.0)               # [te, h]

    # --- fused LayerNorm (feature dim is unpadded -> no lane masking) ------
    inv_h = jnp.float32(1.0 / h)
    mu = jnp.sum(out, axis=-1, keepdims=True) * inv_h
    dlt = out - mu
    var = jnp.sum(dlt * dlt, axis=-1, keepdims=True) * inv_h
    inv = lax.rsqrt(var + jnp.float32(1e-5))
    comb_out_ref[...] = (dlt * inv * gamma_ref[...]
                         + beta_ref[...]).astype(comb_out_ref.dtype)


def encode_and_combine(x, seq_mask, params, *, tile_e=None,
                       matmul_dtype=jnp.bfloat16,
                       token_out_dtype=jnp.bfloat16):
    """Returns (token encodings [E,S,H], layernormed per-expression vectors [E,H])."""
    E, S, D = x.shape
    H = params["w_enc"].shape[1]
    mat_isz = jnp.dtype(matmul_dtype).itemsize
    tok_isz = jnp.dtype(token_out_dtype).itemsize

    # Pad S to a sublane multiple so the in-kernel (te,S,D)->(te*S,D) reshape is
    # layout-trivial; D/H stay unpadded (full-extent block dims are exempt from
    # the (8,128) rule). Padding is skipped entirely if S is already aligned.
    Sp = _round_up(S, 16 if mat_isz == 2 else 8)

    vmem_limit = _vmem_limit_bytes()
    if tile_e is None:
        tile_e = _auto_tile_e(E, Sp, D, H, mat_isz, tok_isz, vmem_limit)
    tile_e = max(8, _round_up(int(tile_e), 8))
    tile_e = min(tile_e, _round_up(E, 8))
    Ep = _round_up(E, tile_e)
    grid = (Ep // tile_e,)

    x_p = _pad_to(x, (Ep, Sp, D)).astype(matmul_dtype)
    mask_p = _pad_to(seq_mask.astype(jnp.float32), (Ep, Sp))
    w_enc = params["w_enc"].astype(matmul_dtype)
    b_enc = params["b_enc"].astype(jnp.float32).reshape(1, H)
    w_q = params["w_q"].astype(jnp.float32).reshape(1, H)
    w_comb = params["w_comb"].astype(matmul_dtype)
    b_comb = params["b_comb"].astype(jnp.float32).reshape(1, H)
    gamma = params["ln_gamma"].astype(jnp.float32).reshape(1, H)
    beta = params["ln_beta"].astype(jnp.float32).reshape(1, H)

    flops = 2 * Ep * Sp * D * H + 2 * Ep * H * H + 4 * Ep * Sp * H
    bytes_accessed = int(Ep * Sp * D * mat_isz + Ep * Sp * 4
                         + Ep * Sp * H * tok_isz + Ep * H * 4
                         + D * H * mat_isz + H * H * mat_isz + 6 * H * 4)
    cost = pl.CostEstimate(flops=int(flops),
                           transcendentals=int(Ep * Sp + 2 * Ep),
                           bytes_accessed=bytes_accessed)

    tok_enc, per_expr_ln = pl.pallas_call(
        _encoder_combiner_kernel,
        out_shape=(jax.ShapeDtypeStruct((Ep, Sp, H), token_out_dtype),
                   jax.ShapeDtypeStruct((Ep, H), jnp.float32)),
        grid=grid,
        in_specs=[
            pl.BlockSpec((tile_e, Sp, D), lambda i: (i, 0, 0)),   # x
            pl.BlockSpec((tile_e, Sp), lambda i: (i, 0)),         # mask
            pl.BlockSpec((D, H), lambda i: (0, 0)),               # w_enc
            pl.BlockSpec((1, H), lambda i: (0, 0)),               # b_enc
            pl.BlockSpec((1, H), lambda i: (0, 0)),               # w_q
            pl.BlockSpec((H, H), lambda i: (0, 0)),               # w_comb
            pl.BlockSpec((1, H), lambda i: (0, 0)),               # b_comb
            pl.BlockSpec((1, H), lambda i: (0, 0)),               # ln gamma
            pl.BlockSpec((1, H), lambda i: (0, 0)),               # ln beta
        ],
        out_specs=(
            pl.BlockSpec((tile_e, Sp, H), lambda i: (i, 0, 0)),   # token encodings
            pl.BlockSpec((tile_e, H), lambda i: (i, 0)),          # LN(per-expr)
        ),
        compiler_params=pltpu.CompilerParams(
            dimension_semantics=("parallel",),
            vmem_limit_bytes=vmem_limit),
        cost_estimate=cost,
    )(x_p, mask_p, w_enc, b_enc, w_q, w_comb, b_comb, gamma, beta)

    tok = tok_enc if (Ep == E and Sp == S) else tok_enc[:E, :S, :]
    comb = per_expr_ln if Ep == E else per_expr_ln[:E]
    return tok, comb


# ---------------------------------------------------------------------------
# Full forward (glue in plain JAX: scatter into CFG-node slots).
# ---------------------------------------------------------------------------
def code_expression_encoder_with_combiner(x_tokens, seq_mask,
                                          cfg_nodes_has_expression_mask,
                                          params, **kwargs):
    tok_enc, per_expr_ln = encode_and_combine(x_tokens, seq_mask, params, **kwargs)

    # Scatter per-expression (already LayerNormed) vectors into CFG-node slots.
    # Nodes without an expression hold LayerNorm(0) == beta, matching the
    # reference module which normalizes the scattered (zero-filled) tensor.
    E = per_expr_ln.shape[0]
    mask_i = cfg_nodes_has_expression_mask.astype(jnp.int32)
    expr_idx = jnp.clip(jnp.cumsum(mask_i) - 1, 0, E - 1)
    gathered = per_expr_ln[expr_idx]                               # [N_cfg, H]
    combined = jnp.where(cfg_nodes_has_expression_mask[:, None],
                         gathered, params["ln_beta"].reshape(1, -1))

    return {"token_seqs": tok_enc, "combined_expressions": combined}


# Pure-JAX reference for the correctness check (mimics the bf16 MXU inputs).
def _reference(x_tokens, seq_mask, cfg_mask, params, matmul_dtype=jnp.bfloat16):
    f32 = jnp.float32
    xq = x_tokens.astype(matmul_dtype).astype(f32)
    we = params["w_enc"].astype(matmul_dtype).astype(f32)
    h = jnp.maximum(jnp.einsum("esd,dh->esh", xq, we)
                    + params["b_enc"].reshape(-1), 0.0)
    scores = jnp.einsum("esh,h->es", h, params["w_q"].reshape(-1))
    scores = jnp.where(seq_mask > 0, scores, -1e30)
    m = jnp.max(scores, axis=-1, keepdims=True)
    p = jnp.exp(scores - m) * seq_mask
    p = p / jnp.maximum(jnp.sum(p, axis=-1, keepdims=True), 1e-20)
    pooled = jnp.einsum("es,esh->eh", p, h)
    wc = params["w_comb"].astype(matmul_dtype).astype(f32)
    per_expr = jnp.maximum(pooled.astype(matmul_dtype).astype(f32) @ wc
                           + params["b_comb"].reshape(-1), 0.0)
    mu = jnp.mean(per_expr, axis=-1, keepdims=True)
    var = jnp.mean((per_expr - mu) ** 2, axis=-1, keepdims=True)
    per_ln = ((per_expr - mu) / jnp.sqrt(var + 1e-5)
              * params["ln_gamma"].reshape(-1) + params["ln_beta"].reshape(-1))
    E = per_expr.shape[0]
    idx = jnp.clip(jnp.cumsum(cfg_mask.astype(jnp.int32)) - 1, 0, E - 1)
    combined = jnp.where(cfg_mask[:, None], per_ln[idx],
                         params["ln_beta"].reshape(1, -1))
    return h, combined


if __name__ == "__main__":
    # E expressions, S tokens each, D token-embedding dim, H = expression
    # encoding dim, N_cfg CFG nodes (sum(mask) == E). Intentionally not
    # sublane/lane-aligned to exercise the alignment handling.
    E, S, D, H, N_CFG = 24, 12, 96, 80, 40

    key = jax.random.PRNGKey(0)
    k_x, k_we, k_wq, k_wc, k_len, k_g, k_b = jax.random.split(key, 7)

    x_tokens = jax.random.normal(k_x, (E, S, D), dtype=jnp.float32)

    lengths = jax.random.randint(k_len, (E,), 1, S + 1)
    seq_mask = (jnp.arange(S)[None, :] < lengths[:, None]).astype(jnp.float32)

    # 24 of 40 CFG nodes carry an expression.
    cfg_nodes_has_expression_mask = jnp.tile(
        jnp.array([1, 1, 0, 1, 0], dtype=bool), N_CFG // 5)
    assert int(cfg_nodes_has_expression_mask.sum()) == E

    params = {
        "w_enc": jax.random.normal(k_we, (D, H), dtype=jnp.float32) * 0.1,
        "b_enc": jnp.full((1, H), 0.01, dtype=jnp.float32),
        "w_q": jax.random.normal(k_wq, (1, H), dtype=jnp.float32) * 0.1,
        "w_comb": jax.random.normal(k_wc, (H, H), dtype=jnp.float32) * 0.1,
        "b_comb": jnp.full((1, H), 0.02, dtype=jnp.float32),
        "ln_gamma": 1.0 + 0.1 * jax.random.normal(k_g, (1, H), dtype=jnp.float32),
        "ln_beta": 0.05 * jax.random.normal(k_b, (1, H), dtype=jnp.float32),
    }

    # tile_e left to the auto-sizer (>=2 grid steps, bounded VMEM footprint).
    out = code_expression_encoder_with_combiner(
        x_tokens, seq_mask, cfg_nodes_has_expression_mask, params)
    jax.block_until_ready(out)

    ref_tok, ref_comb = _reference(x_tokens, seq_mask,
                                   cfg_nodes_has_expression_mask, params)
    assert out["token_seqs"].shape == (E, S, H)
    assert out["combined_expressions"].shape == (N_CFG, H)
    tok_f32 = out["token_seqs"].astype(jnp.float32)
    assert jnp.allclose(tok_f32, ref_tok, atol=2e-2, rtol=2e-2), (
        float(jnp.max(jnp.abs(tok_f32 - ref_tok))))
    assert jnp.allclose(out["combined_expressions"], ref_comb,
                        atol=2e-2, rtol=2e-2), (
        float(jnp.max(jnp.abs(out["combined_expressions"] - ref_comb))))

    print("KERNEL_OK")
</pallas_src>

<mosaic_0001>
module attributes {stable_mosaic.version = 11 : i64} {
  func.func @_encoder_combiner_kernel(%arg0: i32, %arg1: memref<16x16x96xbf16, #tpu.memory_space<vmem>>, %arg2: memref<16x16xf32, #tpu.memory_space<vmem>>, %arg3: memref<96x80xbf16, #tpu.memory_space<vmem>>, %arg4: memref<1x80xf32, #tpu.memory_space<vmem>>, %arg5: memref<1x80xf32, #tpu.memory_space<vmem>>, %arg6: memref<80x80xbf16, #tpu.memory_space<vmem>>, %arg7: memref<1x80xf32, #tpu.memory_space<vmem>>, %arg8: memref<1x80xf32, #tpu.memory_space<vmem>>, %arg9: memref<1x80xf32, #tpu.memory_space<vmem>>, %arg10: memref<16x16x80xbf16, #tpu.memory_space<vmem>>, %arg11: memref<16x80xf32, #tpu.memory_space<vmem>>) attributes {dimension_semantics = [#tpu.dimension_semantics<parallel>], iteration_bounds = array<i64: 2>, scalar_prefetch = 0 : i64, scratch_operands = 0 : i64, tpu.core_type = #tpu.core_type<tc>, window_params = [{transform_indices = @transform_0, window_bounds = array<i64: 16, 16, 96>}, {transform_indices = @transform_1, window_bounds = array<i64: 16, 16>}, {pipeline_mode = #tpu.pipeline_mode<synchronous>, transform_indices = @transform_2, window_bounds = array<i64: 96, 80>}, {pipeline_mode = #tpu.pipeline_mode<synchronous>, transform_indices = @transform_3, window_bounds = array<i64: 1, 80>}, {pipeline_mode = #tpu.pipeline_mode<synchronous>, transform_indices = @transform_4, window_bounds = array<i64: 1, 80>}, {pipeline_mode = #tpu.pipeline_mode<synchronous>, transform_indices = @transform_5, window_bounds = array<i64: 80, 80>}, {pipeline_mode = #tpu.pipeline_mode<synchronous>, transform_indices = @transform_6, window_bounds = array<i64: 1, 80>}, {pipeline_mode = #tpu.pipeline_mode<synchronous>, transform_indices = @transform_7, window_bounds = array<i64: 1, 80>}, {pipeline_mode = #tpu.pipeline_mode<synchronous>, transform_indices = @transform_8, window_bounds = array<i64: 1, 80>}, {transform_indices = @transform_9, window_bounds = array<i64: 16, 16, 80>}, {transform_indices = @transform_10, window_bounds = array<i64: 16, 80>}]} {
    %c0 = arith.constant 0 : index
    %c0_0 = arith.constant 0 : index
    %c0_1 = arith.constant 0 : index
    %0 = vector.load %arg1[%c0, %c0_0, %c0_1] : memref<16x16x96xbf16, #tpu.memory_space<vmem>>, vector<16x16x96xbf16>
    %1 = vector.shape_cast %0 : vector<16x16x96xbf16> to vector<256x96xbf16>
    %c0_2 = arith.constant 0 : index
    %c0_3 = arith.constant 0 : index
    %2 = vector.load %arg3[%c0_2, %c0_3] : memref<96x80xbf16, #tpu.memory_space<vmem>>, vector<96x80xbf16>
    %cst = arith.constant dense<0.000000e+00> : vector<256x80xf32>
    %3 = tpu.matmul %1, %2, %cst {dimension_numbers = #tpu.dot_dimension_numbers<[1], [0], [0], [1], [0, 0, 1, 1], [], []>} : vector<256x96xbf16>, vector<96x80xbf16>, vector<256x80xf32> -> vector<256x80xf32>
    %c0_4 = arith.constant 0 : index
    %c0_5 = arith.constant 0 : index
    %4 = vector.load %arg4[%c0_4, %c0_5] : memref<1x80xf32, #tpu.memory_space<vmem>>, vector<1x80xf32>
    %5 = vector.broadcast %4 : vector<1x80xf32> to vector<256x80xf32>
    %6 = arith.addf %3, %5 : vector<256x80xf32>
    %cst_6 = arith.constant 0.000000e+00 : f32
    %7 = vector.broadcast %cst_6 : f32 to vector<256x80xf32>
    %8 = arith.maximumf %6, %7 : vector<256x80xf32>
    %9 = vector.shape_cast %8 : vector<256x80xf32> to vector<16x16x80xf32>
    %10 = arith.truncf %9 : vector<16x16x80xf32> to vector<16x16x80xbf16>
    %c0_7 = arith.constant 0 : index
    %c0_8 = arith.constant 0 : index
    %c0_9 = arith.constant 0 : index
    %11 = vector.load %arg10[%c0_7, %c0_8, %c0_9] : memref<16x16x80xbf16, #tpu.memory_space<vmem>>, vector<16x16x80xbf16>
    tpu.vector_store %arg10[%c0_7, %c0_8, %c0_9], %10 {strides = array<i32>} : memref<16x16x80xbf16, #tpu.memory_space<vmem>>, vector<16x16x80xbf16>,
    %c0_10 = arith.constant 0 : index
    %c0_11 = arith.constant 0 : index
    %12 = vector.load %arg2[%c0_10, %c0_11] : memref<16x16xf32, #tpu.memory_space<vmem>>, vector<16x16xf32>
    %c0_12 = arith.constant 0 : index
    %c0_13 = arith.constant 0 : index
    %13 = vector.load %arg5[%c0_12, %c0_13] : memref<1x80xf32, #tpu.memory_space<vmem>>, vector<1x80xf32>
    %14 = vector.shape_cast %13 : vector<1x80xf32> to vector<1x1x80xf32>
    %15 = vector.broadcast %14 : vector<1x1x80xf32> to vector<16x16x80xf32>
    %16 = arith.mulf %9, %15 : vector<16x16x80xf32>
    %cst_14 = arith.constant dense<0.000000e+00> : vector<16x16xf32>
    %17 = vector.multi_reduction <add>, %16, %cst_14 [2] : vector<16x16x80xf32> to vector<16x16xf32>
    %cst_15 = arith.constant 0.000000e+00 : f32
    %18 = vector.broadcast %cst_15 : f32 to vector<16x16xf32>
    %19 = arith.cmpf ogt, %12, %18 : vector<16x16xf32>
    %cst_16 = arith.constant -1.000000e+30 : f32
    %20 = vector.broadcast %cst_16 : f32 to vector<16x16xf32>
    %21 = arith.select %19, %17, %20 : vector<16x16xi1>, vector<16x16xf32>
    %cst_17 = arith.constant dense<0xFF800000> : vector<16xf32>
    %22 = vector.multi_reduction <maximumf>, %21, %cst_17 [1] : vector<16x16xf32> to vector<16xf32>
    %23 = vector.shape_cast %22 : vector<16xf32> to vector<16x1xf32>
    %24 = vector.broadcast %23 : vector<16x1xf32> to vector<16x16xf32>
    %25 = arith.subf %21, %24 : vector<16x16xf32>
    %26 = math.exp %25 : vector<16x16xf32>
    %27 = arith.mulf %26, %12 : vector<16x16xf32>
    %cst_18 = arith.constant dense<0.000000e+00> : vector<16xf32>
    %28 = vector.multi_reduction <add>, %27, %cst_18 [1] : vector<16x16xf32> to vector<16xf32>
    %29 = vector.shape_cast %28 : vector<16xf32> to vector<16x1xf32>
    %cst_19 = arith.constant 9.99999968E-21 : f32
    %30 = vector.broadcast %cst_19 : f32 to vector<16x1xf32>
    %31 = arith.maximumf %29, %30 : vector<16x1xf32>
    %32 = tpu.reciprocal %31 {approx = true} : vector<16x1xf32> -> vector<16x1xf32>
    %33 = vector.broadcast %32 : vector<16x1xf32> to vector<16x16xf32>
    %34 = arith.mulf %27, %33 : vector<16x16xf32>
    %35 = vector.shape_cast %34 : vector<16x16xf32> to vector<16x16x1xf32>
    %36 = vector.broadcast %35 : vector<16x16x1xf32> to vector<16x16x80xf32>
    %37 = arith.mulf %36, %9 : vector<16x16x80xf32>
    %cst_20 = arith.constant dense<0.000000e+00> : vector<16x80xf32>
    %38 = vector.multi_reduction <add>, %37, %cst_20 [1] : vector<16x16x80xf32> to vector<16x80xf32>
    %39 = arith.truncf %38 : vector<16x80xf32> to vector<16x80xbf16>
    %c0_21 = arith.constant 0 : index
    %c0_22 = arith.constant 0 : index
    %40 = vector.load %arg6[%c0_21, %c0_22] : memref<80x80xbf16, #tpu.memory_space<vmem>>, vector<80x80xbf16>
    %cst_23 = arith.constant dense<0.000000e+00> : vector<16x80xf32>
    %41 = tpu.matmul %39, %40, %cst_23 {dimension_numbers = #tpu.dot_dimension_numbers<[1], [0], [0], [1], [0, 0, 1, 1], [], []>} : vector<16x80xbf16>, vector<80x80xbf16>, vector<16x80xf32> -> vector<16x80xf32>
    %c0_24 = arith.constant 0 : index
    %c0_25 = arith.constant 0 : index
    %42 = vector.load %arg7[%c0_24, %c0_25] : memref<1x80xf32, #tpu.memory_space<vmem>>, vector<1x80xf32>
    %43 = vector.broadcast %42 : vector<1x80xf32> to vector<16x80xf32>
    %44 = arith.addf %41, %43 : vector<16x80xf32>
    %cst_26 = arith.constant 0.000000e+00 : f32
    %45 = vector.broadcast %cst_26 : f32 to vector<16x80xf32>
    %46 = arith.maximumf %44, %45 : vector<16x80xf32>
    %cst_27 = arith.constant dense<0.000000e+00> : vector<16xf32>
    %47 = vector.multi_reduction <add>, %46, %cst_27 [1] : vector<16x80xf32> to vector<16xf32>
    %48 = vector.shape_cast %47 : vector<16xf32> to vector<16x1xf32>
    %cst_28 = arith.constant 1.250000e-02 : f32
    %49 = vector.broadcast %cst_28 : f32 to vector<16x1xf32>
    %50 = arith.mulf %48, %49 : vector<16x1xf32>
    %51 = vector.broadcast %50 : vector<16x1xf32> to vector<16x80xf32>
    %52 = arith.subf %46, %51 : vector<16x80xf32>
    %53 = arith.mulf %52, %52 : vector<16x80xf32>
    %cst_29 = arith.constant dense<0.000000e+00> : vector<16xf32>
    %54 = vector.multi_reduction <add>, %53, %cst_29 [1] : vector<16x80xf32> to vector<16xf32>
    %55 = vector.shape_cast %54 : vector<16xf32> to vector<16x1xf32>
    %cst_30 = arith.constant 1.250000e-02 : f32
    %56 = vector.broadcast %cst_30 : f32 to vector<16x1xf32>
    %57 = arith.mulf %55, %56 : vector<16x1xf32>
    %cst_31 = arith.constant 9.99999974E-6 : f32
    %58 = vector.broadcast %cst_31 : f32 to vector<16x1xf32>
    %59 = arith.addf %57, %58 : vector<16x1xf32>
    %60 = math.rsqrt %59 : vector<16x1xf32>
    %61 = vector.broadcast %60 : vector<16x1xf32> to vector<16x80xf32>
    %62 = arith.mulf %52, %61 : vector<16x80xf32>
    %c0_32 = arith.constant 0 : index
    %c0_33 = arith.constant 0 : index
    %63 = vector.load %arg8[%c0_32, %c0_33] : memref<1x80xf32, #tpu.memory_space<vmem>>, vector<1x80xf32>
    %64 = vector.broadcast %63 : vector<1x80xf32> to vector<16x80xf32>
    %65 = arith.mulf %62, %64 : vector<16x80xf32>
    %c0_34 = arith.constant 0 : index
    %c0_35 = arith.constant 0 : index
    %66 = vector.load %arg9[%c0_34, %c0_35] : memref<1x80xf32, #tpu.memory_space<vmem>>, vector<1x80xf32>
    %67 = vector.broadcast %66 : vector<1x80xf32> to vector<16x80xf32>
    %68 = arith.addf %65, %67 : vector<16x80xf32>
    %c0_36 = arith.constant 0 : index
    %c0_37 = arith.constant 0 : index
    %69 = vector.load %arg11[%c0_36, %c0_37] : memref<16x80xf32, #tpu.memory_space<vmem>>, vector<16x80xf32>
    tpu.vector_store %arg11[%c0_36, %c0_37], %68 {strides = array<i32>} : memref<16x80xf32, #tpu.memory_space<vmem>>, vector<16x80xf32>,
    return
  }
  func.func @transform_0(%arg0: i32) -> (i32, i32, i32) {
    %c0_i32 = arith.constant 0 : i32
    %c0_i32_0 = arith.constant 0 : i32
    %c0_i32_1 = arith.constant 0 : i32
    return %arg0, %c0_i32, %c0_i32_0 : i32, i32, i32
  }
  func.func @transform_1(%arg0: i32) -> (i32, i32) {
    %c0_i32 = arith.constant 0 : i32
    %c0_i32_0 = arith.constant 0 : i32
    return %arg0, %c0_i32 : i32, i32
  }
  func.func @transform_2(%arg0: i32) -> (i32, i32) {
    %c0_i32 = arith.constant 0 : i32
    %c0_i32_0 = arith.constant 0 : i32
    %c0_i32_1 = arith.constant 0 : i32
    return %c0_i32, %c0_i32_0 : i32, i32
  }
  func.func @transform_3(%arg0: i32) -> (i32, i32) {
    %c0_i32 = arith.constant 0 : i32
    %c0_i32_0 = arith.constant 0 : i32
    %c0_i32_1 = arith.constant 0 : i32
    return %c0_i32, %c0_i32_0 : i32, i32
  }
  func.func @transform_4(%arg0: i32) -> (i32, i32) {
    %c0_i32 = arith.constant 0 : i32
    %c0_i32_0 = arith.constant 0 : i32
    %c0_i32_1 = arith.constant 0 : i32
    return %c0_i32, %c0_i32_0 : i32, i32
  }
  func.func @transform_5(%arg0: i32) -> (i32, i32) {
    %c0_i32 = arith.constant 0 : i32
    %c0_i32_0 = arith.constant 0 : i32
    %c0_i32_1 = arith.constant 0 : i32
    return %c0_i32, %c0_i32_0 : i32, i32
  }
  func.func @transform_6(%arg0: i32) -> (i32, i32) {
    %c0_i32 = arith.constant 0 : i32
    %c0_i32_0 = arith.constant 0 : i32
    %c0_i32_1 = arith.constant 0 : i32
    return %c0_i32, %c0_i32_0 : i32, i32
  }
  func.func @transform_7(%arg0: i32) -> (i32, i32) {
    %c0_i32 = arith.constant 0 : i32
    %c0_i32_0 = arith.constant 0 : i32
    %c0_i32_1 = arith.constant 0 : i32
    return %c0_i32, %c0_i32_0 : i32, i32
  }
  func.func @transform_8(%arg0: i32) -> (i32, i32) {
    %c0_i32 = arith.constant 0 : i32
    %c0_i32_0 = arith.constant 0 : i32
    %c0_i32_1 = arith.constant 0 : i32
    return %c0_i32, %c0_i32_0 : i32, i32
  }
  func.func @transform_9(%arg0: i32) -> (i32, i32, i32) {
    %c0_i32 = arith.constant 0 : i32
    %c0_i32_0 = arith.constant 0 : i32
    %c0_i32_1 = arith.constant 0 : i32
    return %arg0, %c0_i32, %c0_i32_0 : i32, i32, i32
  }
  func.func @transform_10(%arg0: i32) -> (i32, i32) {
    %c0_i32 = arith.constant 0 : i32
    %c0_i32_0 = arith.constant 0 : i32
    return %arg0, %c0_i32 : i32, i32
  }
}

</mosaic_0001>

<bundles_post_ra>
// kernel: tpu_custom_call.1
= control target key start
LH: loop header
LB: loop body
LE: loop exit
PB: predicated region body
PF: predicated region fallthrough
CT: control target
= control target key end

     0   :  { %16 = vsyncpa [#allocation3], 0  ;;  %s3432_s0 = inlined_call_operand.hbm [shape: bf16[32,16,96], index: 0, kind: input, shape index: {}]   ;;  %s3433_s1 = inlined_call_operand.vmem [shape: f32[32,16], index: 1, kind: input, shape index: {}]   ;;  %s3434_s2 = inlined_call_operand.vmem [shape: bf16[96,80], index: 2, kind: input, shape index: {}]   ;;  %s3435_s3 = inlined_call_operand.vmem [shape: f32[1,80], index: 3, kind: input, shape index: {}]   ;;  %s3436_s4 = inlined_call_operand.vmem [shape: f32[1,80], index: 4, kind: input, shape index: {}]   ;;  %s3437_s5 = inlined_call_operand.vmem [shape: bf16[80,80], index: 5, kind: input, shape index: {}]   ;;  %s3438_s6 = inlined_call_operand.vmem [shape: f32[1,80], index: 6, kind: input, shape index: {}]   ;;  %s3439_s7 = inlined_call_operand.vmem [shape: f32[1,80], index: 7, kind: input, shape index: {}]   ;;  %s3440_s8 = inlined_call_operand.vmem [shape: f32[1,80], index: 8, kind: input, shape index: {}]   ;;  %s3441_s9 = inlined_call_operand.hbm [shape: bf16[32,16,80], index: 9, kind: output, shape index: {0}]   ;;  %s3442_s10 = inlined_call_operand.hbm [shape: f32[32,80], index: 10, kind: output, shape index: {1}]  }
   0x1   :  { %18 = vsyncpa [#allocation3 + $0x1], 0 }
   0x2   :  { %19 = vsyncpa [#allocation4], 0 }
   0x3   :  { %21 = vsyncpa [#allocation4 + $0x1], 0 }
   0x4   :  { %22 = vsyncpa [#allocation7], 0 }
   0x5   :  { %24 = vsyncpa [#allocation7 + $0x1], 0  ;;  %s2597_s13 = smov 0   ;;  %s2599_s14 = smov 0  }
   0x6   :  { %s2601_s15 = smov 0   ;;  %s2603_s16 = smov 0  }
   0x7 LB: > { %s2618_s17 = sadd.s32 4294967295, %s2529_s16   ;;  %s2065_s18 = sadd.s32 4294967294, %s2529_s16   ;;  %s2529_s16 = sphi %s2603_s16, %s3472_s16   ;;  %s2525_s15 = sphi %s2601_s15, %s3471_s15   ;;  %s2521_s14 = sphi %s2599_s14, %s3470_s14   ;;  %s2517_s13 = sphi %s2597_s13, %s3469_s13  }
   0x8   : > { %s2622_s19 = sadd.s32 1, %s2529_s16   ;;  %s37_s20 = sadd.s32 1, %s2525_s15 }
   0x9   : > { %s34_s21 = ssub.s32 %s2529_s16, %s2622_s19  ;;  %p44_p0 = scmp.ne.s32.totalorder %s2525_s15, %s2521_s14 }
   0xa   : > { %p35_p1 = scmp.eq.s32.totalorder %s34_s21, 0  ;;  %p45_p2 = scmp.eq.s32.totalorder %s2529_s16, 0 }
   0xb   : > { %p50_p3 = scmp.ne.s32.totalorder %s2521_s14, %s2517_s13  ;;  %p51_p4 = scmp.eq.s32.totalorder %s2618_s17, 0 }
   0xc   : > { %s2634_s22 = scalar_select %p35_p1, %s2525_s15, %s37_s20  }
   0xd   : > { %p2636_p5 = por %p45_p2, %p44_p0  ;;  %p2640_p6 = por %p51_p4, %p50_p3 }
   0xe   : > { %3449 = sst [smem:[#allocation11_spill]] %s2634_s22  ;;  %p247_p7 = scmp.eq.s32.totalorder %s2618_s17, 1 }
   0xf   : > { %p253_p8 = scmp.eq.s32.totalorder %s2065_s18, 1  ;;  %p2320_p10 = scmp.lt.s32.totalorder %s2529_s16, 2 }
  0x10   : > { %p2647_p11 = por %p247_p7, %p44_p0  ;;  %s320_s27 = sand.u32 1, %s2525_s15  }
  0x11   : > { %p2651_p12 = por %p253_p8, %p50_p3  ;;  %s2169_s28 = sshll.u32 %s2529_s16, 11 }
  0x12   : > { %s3452_s25 = scalar_select %p2647_p11, 1, 0 }
  0x13   : > { %s3453_s26 = scalar_select %p2651_p12, 1, 0 }
  0x14   : > { %s2068_s29 = sshll.u32 %s320_s27, 7  ;;  %s2660_s12 = scalar_lea.hbm %s3432_s0, %s2169_s28 }
  0x15   : > { %s324_s18 = scalar_lea.vmem [#allocation2], %s2068_s29  ;;  %p2664_p13 = pnand %p2320_p10, %p2636_p5 }
  0x16   : > { %s332_s20 = sshll.u32 %s324_s18, 4  ;;  %s2670_s22 = scalar_lea.sflag [#allocation3], %s320_s27  ;;  %s2668_s20 = int_to_ptr.vmem [resolvable:$true] %s332_s20 }
  0x17   : > { %s2401_s30 = scalar_lea.hbm %s2660_s12, 2048  ;;  %p2403_p1 = pneg %p2664_p13 }
  0x18   : > { %p2402_p0 = scmp.ne.s32.totalorder %s2660_s12, %s2401_s30  ;;  %s2406_s29 = scalar_lea.hbm %s3432_s0, 4096 }
  0x19   : > { %p2407_p4 = scmp.lt.u32.totalorder %s2660_s12, %s3432_s0  ;;  %p2408_p5 = scmp.lt.u32.totalorder %s2406_s29, %s2401_s30 }
  0x1a   : > { %p2404_p2 = pnand %p2403_p1, %p2402_p0  ;;  %p2410_p8 = scmp.lt.u32.totalorder %s2401_s30, %s2660_s12 }
  0x1b   : > { %p2409_p7 = por %p2408_p5, %p2407_p4 }
  0x1c   : > { %p2405_p3 = pneg %p2404_p2 }
  0x1d   : > { %p2411_p10 = por %p2410_p8, %p2409_p7 }
  0x1f   : > { %p2412_p9 = pnand %p2411_p10, %p2405_p3 }
  0x21   : > { %2415 = shalt.err (!%p2412_p9)
}
  0x22   : > { %s2416_s27 = scalar_lea.vmem %s2668_s20, 2048  ;;  %s2531_s28 = smov [#allocation2]  }
  0x23   : > { %p2417_p0 = scmp.ne.s32.totalorder %s2668_s20, %s2416_s27  ;;  %s2421_s23 = sshll.u32 %s2531_s28, 4  ;;  %s2422_s23 = int_to_ptr.vmem [resolvable:$false] %s2421_s23 }
  0x24   : > { %s2423_s11 = scalar_lea.vmem %s2422_s23, 4096  ;;  %p2424_p11 = scmp.lt.s32.totalorder %s2668_s20, %s2422_s23 }
  0x25   : > { %p2419_p2 = pnand %p2417_p0, %p2403_p1  ;;  %p2425_p4 = scmp.lt.s32.totalorder %s2423_s11, %s2416_s27 }
  0x27   : > { %p2420_p12 = pneg %p2419_p2  ;;  %p2426_p5 = por %p2425_p4, %p2424_p11 }
  0x29   : > { %p2427_p7 = pnand %p2426_p5, %p2420_p12 }
  0x2b   : > { %2430 = shalt.err (!%p2427_p7)
}
  0x2c   : > { %s2532_s30 = smov 64   ;;  %s2533_s29 = smov 4  }
  0x2d   : > { %2312 = dma.hbm_to_vmem [thread:$0]  (!%p2664_p13), %s2660_s12, 2048, %s2668_s20, %s2670_s22, %s2532_s30, %s2532_s30, %s2533_s29  }
  0x2e   : > { %p2072_p9 = scmp.ge.s32.totalorder %s2529_s16, 1  ;;  %p349_p1 = scmp.lt.s32.totalorder %s2529_s16, 3 }
  0x30   : > { %p350_p3 = pnand %p2072_p9, %p349_p1 }
  0x32   : > { %353 = sbr.rel (%p350_p3) target bundleno = 1582 (0x62e), region = 56 }
  0x39   : > { %s2701_s18 = sand.u32 1, %s2521_s14  }
  0x3a   : > { %s2073_s27 = sshll.u32 %s2701_s18, 7  ;;  %s356_s28 = scalar_lea.sflag [#allocation3], %s2701_s18 }
  0x3b   : > { %s2707_s23 = scalar_lea.vmem [#allocation2], %s2073_s27 }
  0x3c   : > { %2504 = dma.done.wait (%p2640_p6), %s356_s28, 2048  }
  0x3d   : > { %2506 = vsyncadd (%p2640_p6), %s356_s28, 4294965248  ;;  %v2362_v0 = vld [vmem:[%s3434_s2] sm:$0xff]   ;;  %v2363_v1 = vld [vmem:[%s3434_s2 + $0x8] sm:$0xff]   ;;  %vm583_vm0 = vcmask 785408   ;;  %vm953_vm1 = vcmask 650240   ;;  %vm1027_vm2 = vcmask 654336  }
  0x3e   : > { %2233 = vmatprep.subr.bf16.mxu0 %v2362_v0  ;;  %2291 = vmatprep.subr.bf16.mxu1 %v2362_v0  ;;  %v2364_v2 = vld [vmem:[%s3434_s2 + $0x10] sm:$0xff]   ;;  %v2368_v3 = vld [vmem:[%s2707_s23] sm:$0xff]   ;;  %v2365_v5 = vld [vmem:[%s3434_s2 + $0x18] sm:$0xff]   ;;  %s2807_s24 = scalar_lea.vmem [#allocation5], %s2073_s27  ;;  %s2076_s27 = sshll.u32 %s2618_s17, 1  ;;  %vm1169_vm3 = vcmask 130112  }
  0x3f   : > { %2234 = vmatpush3.bf16.msra.mxu0 %v2362_v0  ;;  %2297 = vmatpush3.bf16.msra.mxu1 %v2362_v0  ;;  %v2369_v4 = vld [vmem:[%s2707_s23 + $0x50] sm:$0xff]   ;;  %v2366_v6 = vld [vmem:[%s3434_s2 + $0x20] sm:$0xff]   ;;  %v2367_v7 = vld [vmem:[%s3434_s2 + $0x28] sm:$0xff]   ;;  %p408_p6 = scmp.lt.s32.totalorder %s2076_s27, 3  ;;  %vm1306_vm4 = vcmask 1041409   ;;  %vm1308_vm5 = vcmask 1042434  }
  0x40   : > { %2235 = vmatprep.subr.bf16.mxu0 %v2363_v1  ;;  %2292 = vmatprep.subr.bf16.mxu1 %v2363_v1  ;;  %v2370_v8 = vld [vmem:[%s2707_s23 + $0x8] sm:$0xff]   ;;  %v2371_v9 = vld [vmem:[%s2707_s23 + $0x58] sm:$0xff]   ;;  %v2372_v10 = vld [vmem:[%s2707_s23 + $0x10] sm:$0xff]   ;;  %vm1310_vm6 = vcmask 1043459   ;;  %vm1312_vm7 = vcmask 1044484   ;;  %vm1314_vm8 = vcmask 1045509  }
  0x41   : > { %2245 = vmatprep.mubr.msk.bf16.mxu0 %vm583_vm0, %v2368_v3  ;;  %2265 = vmatprep.mubr.msk.bf16.mxu1 %vm583_vm0, %v2369_v4  ;;  %v2374_v11 = vld [vmem:[%s2707_s23 + $0x60] sm:$0xff]   ;;  %v2373_v12 = vld [vmem:[%s2707_s23 + $0x18] sm:$0xff]   ;;  %v2375_v13 = vld [vmem:[%s2707_s23 + $0x68] sm:$0xff]   ;;  %s3474_s27 = smov (!%p408_p6, %s2076_s27), 3  ;;  %vm1316_vm9 = vcmask 1046534   ;;  %vm1318_vm10 = vcmask 1047559  }
  0x42   : > { %v2376_v14 = vld [vmem:[%s2707_s23 + $0x20] sm:$0xff]   ;;  %v2378_v15 = vld [vmem:[%s2707_s23 + $0x70] sm:$0xff]   ;;  %v2377_v16 = vld [vmem:[%s2707_s23 + $0x28] sm:$0xff]   ;;  %s2077_s29 = sshll.u32 %s3474_s27, 3  ;;  %vm1331_vm12 = vcmask 130048   ;;  %vm2535_vm14 = vmmov 0  }
  0x43   : > { %2236 = vmatpush3.bf16.msra.mxu0 %v2363_v1  ;;  %2298 = vmatpush3.bf16.msra.mxu1 %v2363_v1  ;;  %v2380_v17 = vld [vmem:[%s2707_s23 + $0x78] sm:$0xff]   ;;  %v2379_v18 = vld [vmem:[%s2707_s23 + $0x30] sm:$0xff]   ;;  %v2382_v20 = vld [vmem:[%s2707_s23 + $0x40] sm:$0xff]   ;;  %s3136_s12 = scalar_lea.vmem %s3433_s1, %s2077_s29  ;;  %s2203_s11 = sshll.u32 %s2618_s17, 11 }
  0x44   : > { %2237 = vmatprep.subr.bf16.mxu0 %v2364_v2  ;;  %2293 = vmatprep.subr.bf16.mxu1 %v2364_v2  ;;  %v2381_v19 = vld [vmem:[%s2707_s23 + $0x38] sm:$0xff]   ;;  %v2383_v21 = vld [vmem:[%s2707_s23 + $0x48] sm:$0xff]   ;;  %v2766_v22 = vld [vmem:[%s3435_s3] ss:$0 sm:$0xff]  ;;  %s3344_s27 = scalar_lea.hbm %s3441_s9, %s2203_s11  ;;  %s1932_s29 = sshll.u32 %s2807_s24, 4  ;;  %s3347_s29 = int_to_ptr.vmem [resolvable:$true] %s1932_s29 }
  0x45   : > { %v2787_v43 = vld [vmem:[%s3436_s4] ss:$0 sm:$0xff]  ;;  %s1913_s28 = scalar_lea.sflag [#allocation4], %s2701_s18  ;;  %s2431_s22 = scalar_lea.vmem %s3347_s29, 2048 }
  0x46   : > { %p2432_p11 = scmp.ne.s32.totalorder %s3347_s29, %s2431_s22  ;;  %p3465_p12 = scmp.ne.s32.totalorder %s3452_s25, 0 }
  0x47   : > { %2238 = vmatpush3.bf16.msra.mxu0 %v2364_v2  ;;  %2299 = vmatpush3.bf16.msra.mxu1 %v2364_v2 }
  0x48   : > { %2239 = vmatprep.subr.bf16.mxu0 %v2365_v5  ;;  %2294 = vmatprep.subr.bf16.mxu1 %v2365_v5  ;;  %p2433_p13 = pnand %p2432_p11, %p3465_p12 }
  0x4a   : > { %p2434_p8 = pneg %p2433_p13 }
  0x4b   : > { %2240 = vmatpush3.bf16.msra.mxu0 %v2365_v5  ;;  %2300 = vmatpush3.bf16.msra.mxu1 %v2365_v5 }
  0x4c   : > { %2241 = vmatprep.subr.bf16.mxu0 %v2366_v6  ;;  %2295 = vmatprep.subr.bf16.mxu1 %v2366_v6 }
  0x4f   : > { %2242 = vmatpush3.bf16.msra.mxu0 %v2366_v6  ;;  %2301 = vmatpush3.bf16.msra.mxu1 %v2366_v6 }
  0x50   : > { %2243 = vmatprep.subr.bf16.mxu0 %v2367_v7  ;;  %2296 = vmatprep.subr.bf16.mxu1 %v2367_v7 }
  0x53   : > { %2244 = vmatpush3.bf16.msra.mxu0 %v2367_v7  ;;  %2302 = vmatpush3.bf16.msra.mxu1 %v2367_v7 }
  0x56   : > { %2246 = vmatmul.mubr.msk.bf16.vlgmr.msra.gmra.mrb[0].mxu0 %vm583_vm0, %v2370_v8  ;;  %2266 = vmatmul.mubr.msk.bf16.vlgmr.msra.gmra.mrb[0].mxu1 %vm583_vm0, %v2371_v9 }
  0x57   : > { %2249 = vmatprep.mubr.msk.bf16.mxu0 %vm583_vm0, %v2372_v10  ;;  %2269 = vmatprep.mubr.msk.bf16.mxu1 %vm583_vm0, %v2374_v11 }
  0x5e   : > { %2250 = vmatmul.mubr.msk.bf16.gmra.mrb[4].mxu0 %vm583_vm0, %v2373_v12  ;;  %2270 = vmatmul.mubr.msk.bf16.gmra.mrb[4].mxu1 %vm583_vm0, %v2375_v13 }
  0x5f   : > { %2253 = vmatprep.mubr.msk.bf16.mxu0 %vm583_vm0, %v2376_v14  ;;  %2273 = vmatprep.mubr.msk.bf16.mxu1 %vm583_vm0, %v2378_v15 }
  0x66   : > { %2254 = vmatmul.mubr.msk.bf16.gmra.mrb[8].mxu0 %vm583_vm0, %v2377_v16  ;;  %2274 = vmatmul.mubr.msk.bf16.gmra.mrb[8].mxu1 %vm583_vm0, %v2380_v17 }
  0x67   : > { %2257 = vmatprep.mubr.msk.bf16.mxu0 %vm583_vm0, %v2379_v18 }
  0x6e   : > { %2258 = vmatmul.mubr.msk.bf16.gmra.mrb[12].mxu0 %vm583_vm0, %v2381_v19 }
  0x6f   : > { %2261 = vmatprep.mubr.msk.bf16.mxu0 %vm583_vm0, %v2382_v20 }
  0x76   : > { %2262 = vmatmul.mubr.msk.bf16.gmra.mrb[16].mxu0 %vm583_vm0, %v2383_v21 }
 0x129   : > { %v2247_v23 = vpop.f32.mrb[0].mxu0  ;;  %v2267_v24 = vpop.f32.mrb[0].mxu1 }
 0x12a   : > { %v675_v25 = vadd.f32 %v2247_v23, %v2766_v22  ;;  %v755_v26 = vadd.f32 %v2267_v24, %v2766_v22  ;;  %v666_v27 = vpop.f32.mrb[1].mxu0  ;;  %v746_v28 = vpop.f32.mrb[1].mxu1 }
 0x12b   : > { %v667_v29 = vadd.f32 %v2766_v22, %v666_v27  ;;  %v747_v30 = vadd.f32 %v2766_v22, %v746_v28  ;;  %v2248_v31 = vpop.f32.mrb[2].mxu0  ;;  %v2268_v32 = vpop.f32.mrb[2].mxu1 }
 0x12c   : > { %v2772_v33 = vmax.f32 %v675_v25, 0.0  ;;  %v2774_v34 = vmax.f32 %v755_v26, 0.0  ;;  %v678_v35 = vadd.f32 %v2248_v31, %v2766_v22  ;;  %v758_v36 = vadd.f32 %v2268_v32, %v2766_v22  ;;  %v669_v37 = vpop.f32.mrb[3].mxu0  ;;  %v749_v38 = vpop.f32.mrb[3].mxu1 }
 0x12d   : > { %v2778_v39 = vmax.f32 %v667_v29, 0.0  ;;  %v2780_v40 = vmax.f32 %v747_v30, 0.0  ;;  %v670_v41 = vadd.f32 %v2766_v22, %v669_v37  ;;  %v750_v42 = vadd.f32 %v2766_v22, %v749_v38 }
 0x12e   : > { %v2172_v44 = vpack.c.bf16 %v2772_v33, %v2772_v33  ;;  %v2192_v45 = vpack.c.bf16 %v2774_v34, %v2774_v34  ;;  %v2793_v46 = vmax.f32 %v678_v35, 0.0  ;;  %v2795_v47 = vmax.f32 %v758_v36, 0.0 }
 0x12f   : > { %v2170_v48 = vpack.c.bf16 %v2778_v39, %v2778_v39  ;;  %v2190_v49 = vpack.c.bf16 %v2780_v40, %v2780_v40  ;;  %v2801_v50 = vmax.f32 %v670_v41, 0.0  ;;  %v2803_v51 = vmax.f32 %v750_v42, 0.0 }
 0x130   : > { %956 = vst.msk [vmem:[%s2807_s24 + $0x8] sm:$0xf] %vm953_vm1, %v2172_v44  ;;  %976 = vst.msk [vmem:[%s2807_s24 + $0x58] sm:$0xf] %vm953_vm1, %v2192_v45  ;;  %v2173_v52 = vpack.c.bf16 %v2793_v46, %v2793_v46  ;;  %v2193_v53 = vpack.c.bf16 %v2795_v47, %v2795_v47  ;;  %v1017_v54 = vmul.f32 %v2787_v43, %v2774_v34 }
 0x131   : > { %v997_v55 = vmul.f32 %v2787_v43, %v2772_v33  ;;  %954 = vst.msk [vmem:[%s2807_s24] sm:$0xf] %vm953_vm1, %v2170_v48  ;;  %974 = vst.msk [vmem:[%s2807_s24 + $0x50] sm:$0xf] %vm953_vm1, %v2190_v49  ;;  %v2171_v56 = vpack.c.bf16 %v2801_v50, %v2801_v50  ;;  %v2191_v57 = vpack.c.bf16 %v2803_v51, %v2803_v51  ;;  %v2251_v58 = vpop.f32.mrb[4].mxu0  ;;  %v2271_v61 = vpop.f32.mrb[4].mxu1 }
 0x132   : > { %v998_v59 = vmul.f32 %v2787_v43, %v2793_v46  ;;  %v995_v60 = vmul.f32 %v2787_v43, %v2778_v39  ;;  %957 = vst.msk [vmem:[%s2807_s24 + $0xc] sm:$0xf] %vm953_vm1, %v2173_v52  ;;  %977 = vst.msk [vmem:[%s2807_s24 + $0x5c] sm:$0xf] %vm953_vm1, %v2193_v53  ;;  %v1094_v62 = vsel %vm1027_vm2, %v1017_v54, 0.0  ;;  %v691_v0 = vadd.f32 %v2251_v58, %v2766_v22  ;;  %v682_v1 = vpop.f32.mrb[5].mxu0 }
 0x133   : > { %v1034_v63 = vsel %vm1027_vm2, %v997_v55, 0.0  ;;  %v771_v2 = vadd.f32 %v2271_v61, %v2766_v22  ;;  %v762_v3 = vpop.f32.mrb[5].mxu1  ;;  %955 = vst.msk [vmem:[%s2807_s24 + $0x4] sm:$0xf] %vm953_vm1, %v2171_v56  ;;  %975 = vst.msk [vmem:[%s2807_s24 + $0x54] sm:$0xf] %vm953_vm1, %v2191_v57  ;;  %1095 = vadd.xlane.f32.xlu0 %v1094_v62  ;;  %v683_v5 = vadd.f32 %v2766_v22, %v682_v1 }
 0x134   : > { %1035 = vadd.xlane.f32.xlu1 %v1034_v63  ;;  %v1037_v4 = vsel %vm1027_vm2, %v998_v59, 0.0  ;;  %v2252_v6 = vpop.f32.mrb[6].mxu0  ;;  %v763_v7 = vadd.f32 %v2766_v22, %v762_v3  ;;  %v2272_v8 = vpop.f32.mrb[6].mxu1  ;;  %v2848_v9 = vmax.f32 %v691_v0, 0.0  ;;  %v1018_v13 = vmul.f32 %v2787_v43, %v2795_v47 }
 0x135   : > { %v694_v10 = vadd.f32 %v2252_v6, %v2766_v22  ;;  %v685_v11 = vpop.f32.mrb[7].mxu0  ;;  %v2851_v12 = vmax.f32 %v771_v2, 0.0  ;;  %v765_v14 = vpop.f32.mrb[7].mxu1  ;;  %v2855_v15 = vmax.f32 %v683_v5, 0.0  ;;  %v1015_v18 = vmul.f32 %v2787_v43, %v2780_v40 }
 0x136   : > { %v686_v16 = vadd.f32 %v2766_v22, %v685_v11  ;;  %v2858_v17 = vmax.f32 %v763_v7, 0.0  ;;  %v2176_v19 = vpack.c.bf16 %v2848_v9, %v2848_v9  ;;  %v1028_v20 = vsel %vm1027_vm2, %v995_v60, 0.0 }
 0x137   : > { %v2865_v21 = vmax.f32 %v694_v10, 0.0  ;;  %v2196_v23 = vpack.c.bf16 %v2851_v12, %v2851_v12  ;;  %v2174_v24 = vpack.c.bf16 %v2855_v15, %v2855_v15  ;;  %1029 = vadd.xlane.f32.xlu0 %v1028_v20  ;;  %v774_v28 = vadd.f32 %v2272_v8, %v2766_v22 }
 0x138   : > { %1038 = vadd.xlane.f32.xlu1 %v1037_v4  ;;  %v2871_v25 = vmax.f32 %v686_v16, 0.0  ;;  %v2194_v26 = vpack.c.bf16 %v2858_v17, %v2858_v17  ;;  %960 = vst.msk [vmem:[%s2807_s24 + $0x18] sm:$0xf] %vm953_vm1, %v2176_v19  ;;  %v766_v29 = vadd.f32 %v2766_v22, %v765_v14  ;;  %v1097_v31 = vsel %vm1027_vm2, %v1018_v13, 0.0 }
 0x139   : > { %v2177_v27 = vpack.c.bf16 %v2865_v21, %v2865_v21  ;;  %980 = vst.msk [vmem:[%s2807_s24 + $0x68] sm:$0xf] %vm953_vm1, %v2196_v23  ;;  %958 = vst.msk [vmem:[%s2807_s24 + $0x10] sm:$0xf] %vm953_vm1, %v2174_v24  ;;  %v1088_v32 = vsel %vm1027_vm2, %v1015_v18, 0.0  ;;  %v1016_v35 = vmul.f32 %v2787_v43, %v2803_v51  ;;  %v2255_v36 = vpop.f32.mrb[8].mxu0  ;;  %v996_v42 = vmul.f32 %v2787_v43, %v2801_v50 }
 0x13a   : > { %v2175_v30 = vpack.c.bf16 %v2871_v25, %v2871_v25  ;;  %978 = vst.msk [vmem:[%s2807_s24 + $0x60] sm:$0xf] %vm953_vm1, %v2194_v26  ;;  %v2275_v37 = vpop.f32.mrb[8].mxu1  ;;  %v2895_v38 = vmax.f32 %v774_v28, 0.0  ;;  %v2897_v41 = vmax.f32 %v766_v29, 0.0  ;;  %v707_v44 = vadd.f32 %v2255_v36, %v2766_v22  ;;  %v698_v45 = vpop.f32.mrb[9].mxu0 }
 0x13b   : > { %961 = vst.msk [vmem:[%s2807_s24 + $0x1c] sm:$0xf] %vm953_vm1, %v2177_v27  ;;  %v778_v48 = vpop.f32.mrb[9].mxu1  ;;  %1089 = vadd.xlane.f32.xlu0 %v1088_v32  ;;  %v699_v49 = vadd.f32 %v2766_v22, %v698_v45  ;;  %v2256_v52 = vpop.f32.mrb[10].mxu0  ;;  %v1002_v56 = vmul.f32 %v2787_v43, %v2865_v21  ;;  %v1001_v60 = vmul.f32 %v2787_v43, %v2848_v9  ;;  %v1091_v0 = vsel %vm1027_vm2, %v1016_v35, 0.0 }
 0x13c   : > { %3455 = vst [vmem:[#allocation12_spill] sm:$0xff] %v2895_v38  ;;  %959 = vst.msk [vmem:[%s2807_s24 + $0x14] sm:$0xf] %vm953_vm1, %v2175_v30  ;;  %1098 = vadd.xlane.f32.xlu1 %v1097_v31  ;;  %v2276_v53 = vpop.f32.mrb[10].mxu1  ;;  %v2197_v54 = vpack.c.bf16 %v2895_v38, %v2895_v38  ;;  %v2195_v55 = vpack.c.bf16 %v2897_v41, %v2897_v41  ;;  %v2911_v57 = vmax.f32 %v707_v44, 0.0  ;;  %v701_v58 = vpop.f32.mrb[11].mxu0 }
 0x13d   : > { %v781_v59 = vpop.f32.mrb[11].mxu1  ;;  %v2915_v61 = vmax.f32 %v699_v49, 0.0  ;;  %v710_v62 = vadd.f32 %v2256_v52, %v2766_v22  ;;  %v702_v63 = vadd.f32 %v2766_v22, %v701_v58  ;;  %v1031_v1 = vsel %vm1027_vm2, %v996_v42, 0.0 }
 0x13e   : > { %981 = vst.msk [vmem:[%s2807_s24 + $0x6c] sm:$0xf] %vm953_vm1, %v2197_v54  ;;  %979 = vst.msk [vmem:[%s2807_s24 + $0x64] sm:$0xf] %vm953_vm1, %v2195_v55  ;;  %v2180_v2 = vpack.c.bf16 %v2911_v57, %v2911_v57  ;;  %v1022_v3 = vmul.f32 %v2787_v43, %v2895_v38  ;;  %v1049_v7 = vsel %vm1027_vm2, %v1002_v56, 0.0  ;;  %v787_v8 = vadd.f32 %v2275_v37, %v2766_v22 }
 0x13f   : > { %1032 = vadd.xlane.f32.xlu0 %v1031_v1  ;;  %v2178_v4 = vpack.c.bf16 %v2915_v61, %v2915_v61  ;;  %v2931_v5 = vmax.f32 %v710_v62, 0.0  ;;  %v2933_v6 = vmax.f32 %v702_v63, 0.0  ;;  %v779_v10 = vadd.f32 %v2766_v22, %v778_v48 }
 0x140   : > { %1092 = vadd.xlane.f32.xlu1 %v1091_v0  ;;  %964 = vst.msk [vmem:[%s2807_s24 + $0x28] sm:$0xf] %vm953_vm1, %v2180_v2  ;;  %v1046_v11 = vsel %vm1027_vm2, %v1001_v60, 0.0  ;;  %v790_v18 = vadd.f32 %v2276_v53, %v2766_v22  ;;  %v1021_v19 = vmul.f32 %v2787_v43, %v2851_v12  ;;  %v2950_v20 = vmax.f32 %v787_v8, 0.0 }
 0x141   : > { %962 = vst.msk [vmem:[%s2807_s24 + $0x20] sm:$0xf] %vm953_vm1, %v2178_v4  ;;  %v2181_v13 = vpack.c.bf16 %v2931_v5, %v2931_v5  ;;  %v2179_v14 = vpack.c.bf16 %v2933_v6, %v2933_v6  ;;  %v2259_v16 = vpop.f32.mrb[12].mxu0  ;;  %v2953_v24 = vmax.f32 %v779_v10, 0.0  ;;  %v1109_v27 = vsel %vm1027_vm2, %v1022_v3, 0.0 }
 0x142   : > { %3456 = vst [vmem:[#allocation13_spill] sm:$0xff] %v2950_v20  ;;  %v723_v23 = vadd.f32 %v2259_v16, %v2766_v22  ;;  %v714_v26 = vpop.f32.mrb[13].mxu0  ;;  %v2961_v29 = vmax.f32 %v790_v18, 0.0  ;;  %v782_v31 = vadd.f32 %v2766_v22, %v781_v59  ;;  %v1000_v32 = vmul.f32 %v2787_v43, %v2871_v25 }
 0x143   : > { %3457 = vst [vmem:[#allocation14_spill] sm:$0xff] %v2953_v24  ;;  %1047 = vadd.xlane.f32.xlu0 %v1046_v11  ;;  %965 = vst.msk [vmem:[%s2807_s24 + $0x2c] sm:$0xf] %vm953_vm1, %v2181_v13  ;;  %v715_v28 = vadd.f32 %v2766_v22, %v714_v26  ;;  %v2260_v30 = vpop.f32.mrb[14].mxu0  ;;  %v2200_v35 = vpack.c.bf16 %v2950_v20, %v2950_v20  ;;  %v2198_v37 = vpack.c.bf16 %v2953_v24, %v2953_v24 }
 0x144   : > { %1050 = vadd.xlane.f32.xlu1 %v1049_v7  ;;  %963 = vst.msk [vmem:[%s2807_s24 + $0x24] sm:$0xf] %vm953_vm1, %v2179_v14  ;;  %3458 = vst [vmem:[#allocation15_spill] sm:$0xff] %v2961_v29  ;;  %v2968_v36 = vmax.f32 %v723_v23, 0.0  ;;  %v717_v42 = vpop.f32.mrb[15].mxu0  ;;  %v2201_v45 = vpack.c.bf16 %v2961_v29, %v2961_v29  ;;  %v726_v48 = vadd.f32 %v2260_v30, %v2766_v22  ;;  %v2977_v49 = vmax.f32 %v782_v31, 0.0 }
 0x145   : > { %v2972_v44 = vmax.f32 %v715_v28, 0.0  ;;  %v1106_v52 = vsel %vm1027_vm2, %v1021_v19, 0.0  ;;  %v999_v53 = vmul.f32 %v2787_v43, %v2855_v15  ;;  %984 = vst.msk [vmem:[%s2807_s24 + $0x78] sm:$0xf] %vm953_vm1, %v2200_v35  ;;  %982 = vst.msk [vmem:[%s2807_s24 + $0x70] sm:$0xf] %vm953_vm1, %v2198_v37  ;;  %v718_v55 = vadd.f32 %v2766_v22, %v717_v42 }
 0x146   : > { %3459 = vst [vmem:[#allocation16_spill] sm:$0xff] %v2977_v49  ;;  %v2184_v54 = vpack.c.bf16 %v2968_v36, %v2968_v36  ;;  %985 = vst.msk [vmem:[%s2807_s24 + $0x7c] sm:$0xf] %vm953_vm1, %v2201_v45  ;;  %v2993_v58 = vmax.f32 %v726_v48, 0.0  ;;  %v2199_v59 = vpack.c.bf16 %v2977_v49, %v2977_v49  ;;  %v1020_v62 = vmul.f32 %v2787_v43, %v2897_v41 }
 0x147   : > { %1107 = vadd.xlane.f32.xlu0 %v1106_v52  ;;  %v2182_v56 = vpack.c.bf16 %v2972_v44, %v2972_v44  ;;  %v2999_v60 = vmax.f32 %v718_v55, 0.0  ;;  %v1019_v63 = vmul.f32 %v2787_v43, %v2858_v17  ;;  %v1043_v2 = vsel %vm1027_vm2, %v1000_v32, 0.0 }
 0x148   : > { %1110 = vadd.xlane.f32.xlu1 %v1109_v27  ;;  %968 = vst.msk [vmem:[%s2807_s24 + $0x38] sm:$0xf] %vm953_vm1, %v2184_v54  ;;  %v2185_v0 = vpack.c.bf16 %v2993_v58, %v2993_v58  ;;  %983 = vst.msk [vmem:[%s2807_s24 + $0x74] sm:$0xf] %vm953_vm1, %v2199_v59  ;;  %v1040_v3 = vsel %vm1027_vm2, %v999_v53, 0.0  ;;  %v1103_v18 = vsel %vm1027_vm2, %v1020_v62, 0.0  ;;  %v1006_v27 = vmul.f32 %v2787_v43, %v2931_v5 }
 0x149   : > { %966 = vst.msk [vmem:[%s2807_s24 + $0x30] sm:$0xf] %vm953_vm1, %v2182_v56  ;;  %v2263_v1 = vpop.f32.mrb[16].mxu0  ;;  %v2183_v4 = vpack.c.bf16 %v2999_v60, %v2999_v60  ;;  %v1100_v19 = vsel %vm1027_vm2, %v1019_v63, 0.0  ;;  %v1005_v28 = vmul.f32 %v2787_v43, %v2911_v57  ;;  %v1004_v48 = vmul.f32 %v2787_v43, %v2933_v6 }
 0x14a   : > { %v739_v7 = vadd.f32 %v2263_v1, %v2766_v22  ;;  %v730_v8 = vpop.f32.mrb[17].mxu0  ;;  %969 = vst.msk [vmem:[%s2807_s24 + $0x3c] sm:$0xf] %vm953_vm1, %v2185_v0  ;;  %v1061_v42 = vsel %vm1027_vm2, %v1006_v27, 0.0  ;;  %v1003_v52 = vmul.f32 %v2787_v43, %v2915_v61  ;;  %v1024_v55 = vmul.f32 %v2787_v43, %v2977_v49 }
 0x14b   : > { %1041 = vadd.xlane.f32.xlu0 %v1040_v3  ;;  %v731_v10 = vadd.f32 %v2766_v22, %v730_v8  ;;  %v2264_v11 = vpop.f32.mrb[18].mxu0  ;;  %967 = vst.msk [vmem:[%s2807_s24 + $0x34] sm:$0xf] %vm953_vm1, %v2183_v4  ;;  %v1058_v45 = vsel %vm1027_vm2, %v1005_v28, 0.0  ;;  %v1055_v53 = vsel %vm1027_vm2, %v1004_v48, 0.0  ;;  %v1023_v56 = vmul.f32 %v2787_v43, %v2953_v24 }
 0x14c   : > { %1044 = vadd.xlane.f32.xlu1 %v1043_v2  ;;  %v3021_v13 = vmax.f32 %v739_v7, 0.0  ;;  %v742_v14 = vadd.f32 %v2264_v11, %v2766_v22  ;;  %v733_v16 = vpop.f32.mrb[19].mxu0  ;;  %v1052_v54 = vsel %vm1027_vm2, %v1003_v52, 0.0  ;;  %v1115_v59 = vsel %vm1027_vm2, %v1024_v55, 0.0 }
 0x14d   : > { %v3026_v23 = vmax.f32 %v731_v10, 0.0  ;;  %v734_v26 = vadd.f32 %v2766_v22, %v733_v16  ;;  %v1112_v62 = vsel %vm1027_vm2, %v1023_v56, 0.0  ;;  %v1008_v63 = vmul.f32 %v2787_v43, %v2999_v60 }
 0x14e   : > { %v2188_v30 = vpack.c.bf16 %v3021_v13, %v3021_v13  ;;  %v3035_v31 = vmax.f32 %v742_v14, 0.0  ;;  %v1007_v0 = vmul.f32 %v2787_v43, %v2972_v44  ;;  %v1013_v4 = vmul.f32 %v2787_v43, %v3021_v13 }
 0x14f   : > { %1101 = vadd.xlane.f32.xlu0 %v1100_v19  ;;  %v2186_v32 = vpack.c.bf16 %v3026_v23, %v3026_v23  ;;  %v3039_v35 = vmax.f32 %v734_v26, 0.0  ;;  %v1067_v1 = vsel %vm1027_vm2, %v1008_v63, 0.0  ;;  %v1011_v11 = vmul.f32 %v2787_v43, %v3026_v23 }
 0x150   : > { %1104 = vadd.xlane.f32.xlu1 %v1103_v18  ;;  %972 = vst.msk [vmem:[%s2807_s24 + $0x48] sm:$0xf] %vm953_vm1, %v2188_v30  ;;  %v2189_v22 = vpack.c.bf16 %v3035_v31, %v3035_v31  ;;  %v1064_v2 = vsel %vm1027_vm2, %v1007_v0, 0.0  ;;  %v1014_v3 = vmul.f32 %v2787_v43, %v3035_v31  ;;  %v1082_v8 = vsel %vm1027_vm2, %v1013_v4, 0.0 }
 0x151   : > { %970 = vst.msk [vmem:[%s2807_s24 + $0x40] sm:$0xf] %vm953_vm1, %v2186_v32  ;;  %v2187_v37 = vpack.c.bf16 %v3039_v35, %v3039_v35  ;;  %v1012_v10 = vmul.f32 %v2787_v43, %v3039_v35  ;;  %v1076_v16 = vsel %vm1027_vm2, %v1011_v11, 0.0  ;;  %v1010_v18 = vmul.f32 %v2787_v43, %v2993_v58 }
 0x152   : > { %973 = vst.msk [vmem:[%s2807_s24 + $0x4c] sm:$0xf] %vm953_vm1, %v2189_v22  ;;  %v1085_v7 = vsel %vm1027_vm2, %v1014_v3, 0.0  ;;  %v1009_v19 = vmul.f32 %v2787_v43, %v2968_v36  ;;  %v1026_v28 = vmul.f32 %v2787_v43, %v2961_v29  ;;  %v1025_v30 = vmul.f32 %v2787_v43, %v2950_v20  ;;  %v3145_v20 = vld [vmem:[%s3136_s12] sm:$0xff] }
 0x153   : > { %1059 = vadd.xlane.f32.xlu0 %v1058_v45  ;;  %971 = vst.msk [vmem:[%s2807_s24 + $0x44] sm:$0xf] %vm953_vm1, %v2187_v37  ;;  %v1079_v14 = vsel %vm1027_vm2, %v1012_v10, 0.0  ;;  %v1073_v26 = vsel %vm1027_vm2, %v1010_v18, 0.0  ;;  %v1158_v3 = vlaneseq  ;;  %vm1124_vm11 = vcmp.gt.f32.partialorder %v3145_v20, 0.0 }
 0x154   : > { %1062 = vadd.xlane.f32.xlu1 %v1061_v42  ;;  %v1070_v27 = vsel %vm1027_vm2, %v1009_v19, 0.0  ;;  %v1121_v32 = vsel %vm1027_vm2, %v1026_v28, 0.0  ;;  %v1118_v22 = vsel %vm1027_vm2, %v1025_v30, 0.0 }
 0x157   : > { %1053 = vadd.xlane.f32.xlu0 %v1052_v54 }
 0x158   : > { %1056 = vadd.xlane.f32.xlu1 %v1055_v53 }
 0x15b   : > { %1113 = vadd.xlane.f32.xlu0 %v1112_v62 }
 0x15c   : > { %1116 = vadd.xlane.f32.xlu1 %v1115_v59 }
 0x15f   : > { %1065 = vadd.xlane.f32.xlu0 %v1064_v2 }
 0x160   : > { %1068 = vadd.xlane.f32.xlu1 %v1067_v1 }
 0x163   : > { %1083 = vadd.xlane.f32.xlu0 %v1082_v8  ;;  %v1159_v8 = vand.u32 127, %v1158_v3 }
 0x164   : > { %1086 = vadd.xlane.f32.xlu1 %v1085_v7 }
 0x167   : > { %1077 = vadd.xlane.f32.xlu0 %v1076_v16  ;;  %v3118_v16 = vshrl.u32 %v1158_v3, 7 }
 0x168   : > { %1080 = vadd.xlane.f32.xlu1 %v1079_v14  ;;  %v1164_v14 = vadd.s32 4294967288, %v1159_v8 }
 0x16b   : > { %1071 = vadd.xlane.f32.xlu0 %v1070_v27  ;;  %v3128_v27 = vsub.s32 %v1159_v8, %v3118_v16 }
 0x16c   : > { %1074 = vadd.xlane.f32.xlu1 %v1073_v26  ;;  %v3125_v26 = vsub.s32 %v1164_v14, %v3118_v16 }
 0x16f   : > { %1119 = vadd.xlane.f32.xlu0 %v1118_v22 }
 0x170   : > { %1122 = vadd.xlane.f32.xlu1 %v1121_v32 }
 0x1c0   : > { %v3097_v37 = vpop.xlane.xlu0 %1095 }
 0x1c1   : > { %v1036_v42 = vpop.xlane.xlu1 %1035 }
 0x1c4   : > { %v1030_v48 = vpop.xlane.xlu0 %1029 }
 0x1c5   : > { %v1039_v45 = vpop.xlane.xlu1 %1038  ;;  %v1163_v8 = vrot.slane %v1030_v48, %v3128_v27 }
 0x1c6   : > { %v1178_v14 = vrot.slane %v1039_v45, %v3125_v26 }
 0x1c8   : > { %v3101_v53 = vpop.xlane.xlu0 %1089 }
 0x1c9   : > { %v3099_v52 = vpop.xlane.xlu1 %1098 }
 0x1cc   : > { %v1033_v43 = vpop.xlane.xlu0 %1032 }
 0x1cd   : > { %v3103_v54 = vpop.xlane.xlu1 %1092  ;;  %v1168_v28 = vrot.slane %v1033_v43, %v3125_v26 }
 0x1cf   : > { %v1170_v29 = vsel %vm1169_vm3, %v1168_v28, %v1163_v8  ;;  %v1259_v28 = vrot.slane %v3103_v54, %v3125_v26 }
 0x1d0   : > { %v1048_v56 = vpop.xlane.xlu0 %1047 }
 0x1d1   : > { %v1051_v55 = vpop.xlane.xlu1 %1050 }
 0x1d2   : > { %v1196_v43 = vrot.slane %v1051_v55, %v3125_v26  ;;  %v1264_v55 = vrot.slane %v3097_v37, %v3128_v27 }
 0x1d4   : > { %v3107_v62 = vpop.xlane.xlu0 %1107 }
 0x1d5   : > { %v3105_v59 = vpop.xlane.xlu1 %1110 }
 0x1d8   : > { %v1042_v0 = vpop.xlane.xlu0 %1041 }
 0x1d9   : > { %v1045_v63 = vpop.xlane.xlu1 %1044  ;;  %v1183_v32 = vrot.slane %v1042_v0, %v3128_v27  ;;  %v1174_v0 = vrot.slane %v1036_v42, %v3128_v27 }
 0x1da   : > { %v1187_v30 = vrot.slane %v1045_v63, %v3125_v26  ;;  %v1192_v63 = vrot.slane %v1048_v56, %v3128_v27  ;;  %v1268_v56 = vrot.slane %v3099_v52, %v3125_v26 }
 0x1db   : > { %v1179_v42 = vsel %vm1169_vm3, %v1178_v14, %v1174_v0  ;;  %v1255_v0 = vrot.slane %v3101_v53, %v3128_v27 }
 0x1dc   : > { %v3111_v2 = vpop.xlane.xlu0 %1101  ;;  %v1188_v49 = vsel %vm1169_vm3, %v1187_v30, %v1183_v32 }
 0x1dd   : > { %v3109_v1 = vpop.xlane.xlu1 %1104  ;;  %v1273_v52 = vrot.slane %v3111_v2, %v3128_v27  ;;  %v1269_v2 = vsel %vm1169_vm3, %v1268_v56, %v1264_v55 }
 0x1de   : > { %v1277_v37 = vrot.slane %v3109_v1, %v3125_v26 }
 0x1e0   : > { %v3116_v7 = vpop.xlane.xlu0 %1059  ;;  %v1278_v55 = vsel %vm1169_vm3, %v1277_v37, %v1273_v52 }
 0x1e1   : > { %v3114_v4 = vpop.xlane.xlu1 %1062 }
 0x1e4   : > { %v1054_v11 = vpop.xlane.xlu0 %1053 }
 0x1e5   : > { %v1057_v10 = vpop.xlane.xlu1 %1056  ;;  %v1201_v48 = vrot.slane %v1054_v11, %v3128_v27  ;;  %v1197_v11 = vsel %vm1169_vm3, %v1196_v43, %v1192_v63 }
 0x1e6   : > { %v1205_v45 = vrot.slane %v1057_v10, %v3125_v26  ;;  %v1307_v10 = vsel %vm1306_vm4, %v1179_v42, %v1170_v29  ;;  %v1260_v42 = vsel %vm1169_vm3, %v1259_v28, %v1255_v0 }
 0x1e7   : > { %v1309_v30 = vsel %vm1308_vm5, %v1188_v49, %v1307_v10  ;;  %v1214_v49 = vrot.slane %v3114_v4, %v3125_v26  ;;  %v1282_v4 = vrot.slane %v3107_v62, %v3128_v27 }
 0x1e8   : > { %v3122_v19 = vpop.xlane.xlu0 %1113  ;;  %v1206_v54 = vsel %vm1169_vm3, %v1205_v45, %v1201_v48 }
 0x1e9   : > { %v3120_v18 = vpop.xlane.xlu1 %1116  ;;  %v1291_v37 = vrot.slane %v3122_v19, %v3128_v27 }
 0x1ea   : > { %v1295_v28 = vrot.slane %v3120_v18, %v3125_v26 }
 0x1ec   : > { %v1066_v3 = vpop.xlane.xlu0 %1065  ;;  %v1296_v0 = vsel %vm1169_vm3, %v1295_v28, %v1291_v37 }
 0x1ed   : > { %v1069_v22 = vpop.xlane.xlu1 %1068  ;;  %v1219_v8 = vrot.slane %v1066_v3, %v3128_v27  ;;  %v1311_v3 = vsel %vm1310_vm6, %v1197_v11, %v1309_v30 }
 0x1ee   : > { %v1223_v29 = vrot.slane %v1069_v22, %v3125_v26  ;;  %v1286_v22 = vrot.slane %v3105_v59, %v3125_v26  ;;  %v1313_v45 = vsel %vm1312_vm7, %v1206_v54, %v1311_v3 }
 0x1f0   : > { %v1084_v38 = vpop.xlane.xlu0 %1083  ;;  %v1224_v53 = vsel %vm1169_vm3, %v1223_v29, %v1219_v8  ;;  %v1287_v54 = vsel %vm1169_vm3, %v1286_v22, %v1282_v4 }
 0x1f1   : > { %v1087_v24 = vpop.xlane.xlu1 %1086  ;;  %v1246_v14 = vrot.slane %v1084_v38, %v3128_v27 }
 0x1f2   : > { %v1250_v32 = vrot.slane %v1087_v24, %v3125_v26  ;;  %v1210_v24 = vrot.slane %v3116_v7, %v3128_v27 }
 0x1f4   : > { %v1078_v63 = vpop.xlane.xlu0 %1077  ;;  %v1251_v7 = vsel %vm1169_vm3, %v1250_v32, %v1246_v14  ;;  %v1215_v11 = vsel %vm1169_vm3, %v1214_v49, %v1210_v24 }
 0x1f5   : > { %v1081_v43 = vpop.xlane.xlu1 %1080  ;;  %v1237_v1 = vrot.slane %v1078_v63, %v3128_v27  ;;  %v1315_v14 = vsel %vm1314_vm8, %v1215_v11, %v1313_v45 }
 0x1f6   : > { %v1241_v38 = vrot.slane %v1081_v43, %v3125_v26  ;;  %v1317_v8 = vsel %vm1316_vm9, %v1224_v53, %v1315_v14  ;;  %v987_v43 = vld [vmem:[%s3136_s12 + $0x8] sm:$0xff]  ;;  %v1360_v14 = vsub.s32 0, %v3118_v16  ;;  %s2536_s12 = smov [#allocation5]  }
 0x1f7   : > { %vm1125_vm13 = vcmp.gt.f32.partialorder %v987_v43, 0.0  ;;  %s2435_s20 = sshll.u32 %s2536_s12, 4  ;;  %s2436_s20 = int_to_ptr.vmem [resolvable:$false] %s2435_s20 }
 0x1f8   : > { %v1242_v48 = vsel %vm1169_vm3, %v1241_v38, %v1237_v1  ;;  %v1072_v10 = vpop.xlane.xlu0 %1071  ;;  %s2437_s21 = scalar_lea.vmem %s2436_s20, 4096  ;;  %p2438_p10 = scmp.lt.s32.totalorder %s3347_s29, %s2436_s20 }
 0x1f9   : > { %v1320_v59 = vsel %vm1306_vm4, %v1251_v7, %v1242_v48  ;;  %v1075_v56 = vpop.xlane.xlu1 %1074  ;;  %v1228_v32 = vrot.slane %v1072_v10, %v3128_v27  ;;  %p2439_p0 = scmp.lt.s32.totalorder %s2437_s21, %s2431_s22 }
 0x1fa   : > { %v1321_v62 = vsel %vm1308_vm5, %v1260_v42, %v1320_v59  ;;  %v1232_v30 = vrot.slane %v1075_v56, %v3125_v26 }
 0x1fb   : > { %v1322_v52 = vsel %vm1310_vm6, %v1269_v2, %v1321_v62  ;;  %p2440_p2 = por %p2439_p0, %p2438_p10 }
 0x1fc   : > { %v1233_v29 = vsel %vm1169_vm3, %v1232_v30, %v1228_v32  ;;  %v1323_v63 = vsel %vm1312_vm7, %v1278_v55, %v1322_v52  ;;  %v1120_v24 = vpop.xlane.xlu0 %1119 }
 0x1fd   : > { %v1123_v49 = vpop.xlane.xlu1 %1122  ;;  %v1319_v18 = vsel %vm1318_vm10, %v1233_v29, %v1317_v8  ;;  %v1324_v38 = vsel %vm1314_vm8, %v1287_v54, %v1323_v63  ;;  %v1300_v1 = vrot.slane %v1120_v24, %v3128_v27  ;;  %v1371_v8 = vsub.s32 1, %v3118_v16  ;;  %p2441_p4 = pnand %p2440_p2, %p2434_p8 }
 0x1fe   : > { %v1304_v19 = vrot.slane %v1123_v49, %v3125_v26  ;;  %v1329_v2 = vsel %vm1124_vm11, %v1319_v18, -1e+30  ;;  %v1325_v4 = vsel %vm1316_vm9, %v1296_v0, %v1324_v38  ;;  %v1393_v24 = vsub.s32 3, %v3118_v16 }
 0x1ff   : > { %v1332_v22 = vsel %vm1331_vm12, %v1329_v2, -inf }
 0x200   : > { %1333 = vmax.xlane.f32.xlu0 %v1332_v22  ;;  %v1305_v3 = vsel %vm1169_vm3, %v1304_v19, %v1300_v1  ;;  %v1404_v19 = vsub.s32 4, %v3118_v16  ;;  %v1426_v22 = vsub.s32 6, %v3118_v16 }
 0x201   : > { %v1326_v45 = vsel %vm1318_vm10, %v1305_v3, %v1325_v4  ;;  %v1437_v4 = vsub.s32 7, %v3118_v16 }
 0x202   : > { %v1330_v7 = vsel %vm1125_vm13, %v1326_v45, -1e+30 }
 0x203   : > { %v1335_v26 = vsel %vm1331_vm12, %v1330_v7, -inf }
 0x204   : > { %1336 = vmax.xlane.f32.xlu1 %v1335_v26 }
 0x28d   : > { %v1334_v27 = vpop.xlane.xlu0 %1333 }
 0x28e   : > { %v1338_v48 = vsub.f32 %v1329_v2, %v1334_v27  ;;  %v1415_v2 = vsub.s32 5, %v3118_v16 }
 0x290   : > { %v1340_v42 = vmul.f32 1.442695, %v1338_v48 }
 0x291   : > { %v1337_v55 = vpop.xlane.xlu1 %1336 }
 0x292   : > { %2389 = vpow2.f32 %v1340_v42  ;;  %v1339_v53 = vsub.f32 %v1330_v7, %v1337_v55 }
 0x294   : > { %v1342_v59 = vmul.f32 1.442695, %v1339_v53 }
 0x296   : > { %2391 = vpow2.f32 %v1342_v59 }
 0x29c   : > { %v2390_v56 = vpop.eup %2389 }
 0x29d   : > { %v1344_v10 = vmul.f32 %v2390_v56, %v3145_v20  ;;  %v1382_v20 = vsub.s32 2, %v3118_v16 }
 0x29f   : > { %v1346_v11 = vsel %vm1331_vm12, %v1344_v10, 0.0 }
 0x2a0   : > { %v2392_v62 = vpop.eup %2391  ;;  %1347 = vadd.xlane.f32.xlu0 %v1346_v11  ;;  %v2534_v11 = vmov 0.0  }
 0x2a1   : > { %v1345_v30 = vmul.f32 %v2392_v62, %v987_v43  ;;  %2277 = vmatprep.subr.bf16.mxu1 %v2534_v11  ;;  %v2385_v62 = vld [vmem:[%s3437_s5 + $0x8] sm:$0xff]   ;;  %2287 = vmatprep.mubr.msk.bf16.mxu1 %vm2535_vm14, %v2534_v11 }
 0x2a3   : > { %v1349_v32 = vsel %vm1331_vm12, %v1345_v30, 0.0 }
 0x2a4   : > { %1350 = vadd.xlane.f32.xlu1 %v1349_v32  ;;  %v2387_v32 = vld [vmem:[%s3437_s5 + $0x18] sm:$0xff]  }
 0x32d   : > { %v1348_v28 = vpop.xlane.xlu0 %1347 }
 0x32e   : > { %v1352_v37 = vmax.f32 %v1348_v28, 1e-20  ;;  %v2388_v28 = vld [vmem:[%s3437_s5 + $0x20] sm:$0xff]  }
 0x330   : > { %2393 = vrcp.f32 %v1352_v37 }
 0x331   : > { %v1351_v63 = vpop.xlane.xlu1 %1350 }
 0x332   : > { %v1353_v18 = vmax.f32 %v1351_v63, 1e-20 }
 0x334   : > { %2395 = vrcp.f32 %v1353_v18 }
 0x33a   : > { %v2394_v52 = vpop.eup %2393 }
 0x33b   : > { %v1356_v54 = vmul.f32 %v2394_v52, %v1344_v10  ;;  %v2384_v10 = vld [vmem:[%s3437_s5] sm:$0xff]  }
 0x33c   : > { %2278 = vmatpush3.bf16.msra.mxu1 %v2384_v10 }
 0x33d   : > { %v1361_v29 = vrot.slane %v1356_v54, %v1360_v14  ;;  %v1372_v49 = vrot.slane %v1356_v54, %v1371_v8  ;;  %v1383_v43 = vrot.slane %v1356_v54, %v1382_v20  ;;  %v1394_v38 = vrot.slane %v1356_v54, %v1393_v24  ;;  %2279 = vmatprep.subr.bf16.mxu1 %v2534_v11 }
 0x33e   : > { %v1405_v1 = vrot.slane %v1356_v54, %v1404_v19  ;;  %v1416_v0 = vrot.slane %v1356_v54, %v1415_v2  ;;  %v1427_v3 = vrot.slane %v1356_v54, %v1426_v22  ;;  %v2396_v45 = vpop.eup %2395  ;;  %v1438_v26 = vrot.slane %v1356_v54, %v1437_v4 }
 0x33f   : > { %1367 = vbcast.lane.b32.xlu1 %v1361_v29, 264  ;;  %1363 = vbcast.lane.b32.xlu0 %v1361_v29, 256  ;;  %v1357_v7 = vmul.f32 %v2396_v45, %v1345_v30  ;;  %v2386_v30 = vld [vmem:[%s3437_s5 + $0x10] sm:$0xff]  }
 0x340   : > { %2280 = vmatpush3.bf16.msra.mxu1 %v2385_v62 }
 0x341   : > { %v1449_v27 = vrot.slane %v1357_v7, %v1360_v14  ;;  %v1460_v48 = vrot.slane %v1357_v7, %v1371_v8  ;;  %v1471_v42 = vrot.slane %v1357_v7, %v1382_v20  ;;  %v1482_v55 = vrot.slane %v1357_v7, %v1393_v24  ;;  %2281 = vmatprep.subr.bf16.mxu1 %v2534_v11 }
 0x342   : > { %v1493_v16 = vrot.slane %v1357_v7, %v1404_v19  ;;  %v1504_v53 = vrot.slane %v1357_v7, %v1415_v2  ;;  %v1515_v59 = vrot.slane %v1357_v7, %v1426_v22  ;;  %v1526_v56 = vrot.slane %v1357_v7, %v1437_v4 }
 0x343   : > { %1374 = vbcast.lane.b32.xlu1 %v1372_v49, 256  ;;  %1385 = vbcast.lane.b32.xlu0 %v1383_v43, 256 }
 0x344   : > { %2282 = vmatpush3.bf16.msra.mxu1 %v2386_v30 }
 0x345   : > { %2283 = vmatprep.subr.bf16.mxu1 %v2534_v11 }
 0x347   : > { %1378 = vbcast.lane.b32.xlu1 %v1372_v49, 264  ;;  %1396 = vbcast.lane.b32.xlu0 %v1394_v38, 256 }
 0x348   : > { %2284 = vmatpush3.bf16.msra.mxu1 %v2387_v32 }
 0x349   : > { %2285 = vmatprep.subr.bf16.mxu1 %v2534_v11 }
 0x34b   : > { %1389 = vbcast.lane.b32.xlu1 %v1383_v43, 264  ;;  %1407 = vbcast.lane.b32.xlu0 %v1405_v1, 256 }
 0x34c   : > { %2286 = vmatpush3.bf16.msra.mxu1 %v2388_v28 }
 0x34f   : > { %1400 = vbcast.lane.b32.xlu1 %v1394_v38, 264  ;;  %1418 = vbcast.lane.b32.xlu0 %v1416_v0, 256 }
 0x353   : > { %1411 = vbcast.lane.b32.xlu1 %v1405_v1, 264  ;;  %1429 = vbcast.lane.b32.xlu0 %v1427_v3, 256 }
 0x357   : > { %1422 = vbcast.lane.b32.xlu1 %v1416_v0, 264  ;;  %1440 = vbcast.lane.b32.xlu0 %v1438_v26, 256 }
 0x35b   : > { %1433 = vbcast.lane.b32.xlu1 %v1427_v3, 264  ;;  %1451 = vbcast.lane.b32.xlu0 %v1449_v27, 256 }
 0x35f   : > { %1444 = vbcast.lane.b32.xlu1 %v1438_v26, 264  ;;  %1462 = vbcast.lane.b32.xlu0 %v1460_v48, 256 }
 0x363   : > { %1455 = vbcast.lane.b32.xlu1 %v1449_v27, 264  ;;  %1473 = vbcast.lane.b32.xlu0 %v1471_v42, 256 }
 0x367   : > { %1466 = vbcast.lane.b32.xlu1 %v1460_v48, 264  ;;  %1484 = vbcast.lane.b32.xlu0 %v1482_v55, 256 }
 0x36b   : > { %1477 = vbcast.lane.b32.xlu1 %v1471_v42, 264  ;;  %1495 = vbcast.lane.b32.xlu0 %v1493_v16, 256 }
 0x36f   : > { %1488 = vbcast.lane.b32.xlu1 %v1482_v55, 264  ;;  %1506 = vbcast.lane.b32.xlu0 %v1504_v53, 256 }
 0x373   : > { %1499 = vbcast.lane.b32.xlu1 %v1493_v16, 264  ;;  %1517 = vbcast.lane.b32.xlu0 %v1515_v59, 256 }
 0x377   : > { %1510 = vbcast.lane.b32.xlu1 %v1504_v53, 264  ;;  %1528 = vbcast.lane.b32.xlu0 %v1526_v56, 256 }
 0x37b   : > { %1521 = vbcast.lane.b32.xlu1 %v1515_v59, 264 }
 0x37f   : > { %1532 = vbcast.lane.b32.xlu1 %v1526_v56, 264 }
 0x3b1   : > { %v1368_v37 = vpop.permute.xlu1 %1367  ;;  %v1364_v14 = vpop.permute.xlu0 %1363 }
 0x3b2   : > { %v1535_v29 = vmul.f32 %v1368_v37, %v2801_v50  ;;  %v1534_v8 = vmul.f32 %v1364_v14, %v2778_v39 }
 0x3b4   : > { %v1567_v49 = vsel %vm1027_vm2, %v1535_v29, 0.0  ;;  %v1566_v43 = vsel %vm1027_vm2, %v1534_v8, 0.0 }
 0x3b5   : > { %v1375_v52 = vpop.permute.xlu1 %1374  ;;  %v1386_v54 = vpop.permute.xlu0 %1385  ;;  %v1568_v24 = vadd.f32 %v1567_v49, %v1566_v43 }
 0x3b6   : > { %v1536_v1 = vmul.f32 %v1375_v52, %v2772_v33  ;;  %v1538_v55 = vmul.f32 %v1386_v54, %v2855_v15 }
 0x3b7   : > { %v1569_v2 = vrot.slane %v1568_v24, 4 }
 0x3b8   : > { %v1575_v39 = vsel %vm1027_vm2, %v1536_v1, 0.0  ;;  %v1584_v10 = vsel %vm1027_vm2, %v1538_v55, 0.0 }
 0x3b9   : > { %v1379_v20 = vpop.permute.xlu1 %1378  ;;  %v1397_v63 = vpop.permute.xlu0 %1396  ;;  %v1570_v4 = vadd.f32 %v1569_v2, %v1568_v24 }
 0x3ba   : > { %v1537_v18 = vmul.f32 %v1379_v20, %v2793_v46  ;;  %v1540_v37 = vmul.f32 %v1397_v63, %v2848_v9 }
 0x3bb   : > { %v1571_v48 = vrot.slane %v1570_v4, 2 }
 0x3bc   : > { %v1576_v0 = vsel %vm1027_vm2, %v1537_v18, 0.0  ;;  %v1593_v43 = vsel %vm1027_vm2, %v1540_v37, 0.0 }
 0x3bd   : > { %v1390_v38 = vpop.permute.xlu1 %1389  ;;  %v1408_v19 = vpop.permute.xlu0 %1407  ;;  %v1577_v3 = vadd.f32 %v1576_v0, %v1575_v39  ;;  %v1572_v53 = vadd.f32 %v1571_v48, %v1570_v4 }
 0x3be   : > { %v1539_v27 = vmul.f32 %v1390_v38, %v2871_v25  ;;  %v1542_v29 = vmul.f32 %v1408_v19, %v2915_v61 }
 0x3bf   : > { %v1578_v26 = vrot.slane %v1577_v3, 4  ;;  %v1573_v32 = vrot.slane %v1572_v53, 1 }
 0x3c0   : > { %v1585_v16 = vsel %vm1027_vm2, %v1539_v27, 0.0  ;;  %v1602_v2 = vsel %vm1027_vm2, %v1542_v29, 0.0 }
 0x3c1   : > { %v1401_v22 = vpop.permute.xlu1 %1400  ;;  %v1419_v50 = vpop.permute.xlu0 %1418  ;;  %v1579_v33 = vadd.f32 %v1578_v26, %v1577_v3  ;;  %v1586_v11 = vadd.f32 %v1585_v16, %v1584_v10  ;;  %v1574_v54 = vadd.f32 %v1573_v32, %v1572_v53 }
 0x3c2   : > { %v1541_v30 = vmul.f32 %v1401_v22, %v2865_v21  ;;  %v1544_v8 = vmul.f32 %v1419_v50, %v2911_v57 }
 0x3c3   : > { %v1580_v62 = vrot.slane %v1579_v33, 2  ;;  %v1587_v14 = vrot.slane %v1586_v11, 4  ;;  %v1710_v1 = vpack.c.bf16 %v1574_v54, %v1574_v54 }
 0x3c4   : > { %v1594_v15 = vsel %vm1027_vm2, %v1541_v30, 0.0  ;;  %v1611_v61 = vsel %vm1027_vm2, %v1544_v8, 0.0 }
 0x3c5   : > { %v1412_v45 = vpop.permute.xlu1 %1411  ;;  %v1430_v7 = vpop.permute.xlu0 %1429  ;;  %v1581_v52 = vadd.f32 %v1580_v62, %v1579_v33  ;;  %v1588_v24 = vadd.f32 %v1587_v14, %v1586_v11  ;;  %v1595_v18 = vadd.f32 %v1594_v15, %v1593_v43  ;;  %v3290_v15 = vunpack.c.l.b16 %v1710_v1 }
 0x3c6   : > { %v1543_v21 = vmul.f32 %v1412_v45, %v2933_v6  ;;  %v1546_v38 = vmul.f32 %v1430_v7, %v2972_v44 }
 0x3c7   : > { %v1582_v9 = vrot.slane %v1581_v52, 1  ;;  %v1589_v39 = vrot.slane %v1588_v24, 2  ;;  %v1596_v3 = vrot.slane %v1595_v18, 4 }
 0x3c8   : > { %v1603_v22 = vsel %vm1027_vm2, %v1543_v21, 0.0 }
 0x3c9   : > { %v1423_v46 = vpop.permute.xlu1 %1422  ;;  %v1441_v42 = vpop.permute.xlu0 %1440  ;;  %v1583_v45 = vadd.f32 %v1582_v9, %v1581_v52  ;;  %v1604_v27 = vadd.f32 %v1603_v22, %v1602_v2  ;;  %v1590_v16 = vadd.f32 %v1589_v39, %v1588_v24  ;;  %v1597_v53 = vadd.f32 %v1596_v3, %v1595_v18 }
 0x3ca   : > { %v1545_v6 = vmul.f32 %v1423_v46, %v2931_v5  ;;  %v1548_v5 = vmul.f32 %v1441_v42, %v2968_v36 }
 0x3cb   : > { %v1711_v10 = vpack.c.bf16 %v1583_v45, %v1583_v45  ;;  %v1605_v11 = vrot.slane %v1604_v27, 4  ;;  %v1591_v54 = vrot.slane %v1590_v16, 1  ;;  %v1598_v24 = vrot.slane %v1597_v53, 2 }
 0x3cc   : > { %v1612_v55 = vsel %vm1027_vm2, %v1545_v6, 0.0  ;;  %v1629_v30 = vsel %vm1027_vm2, %v1548_v5, 0.0 }
 0x3cd   : > { %v1434_v59 = vpop.permute.xlu1 %1433  ;;  %v1452_v56 = vpop.permute.xlu0 %1451  ;;  %v1613_v62 = vadd.f32 %v1612_v55, %v1611_v61  ;;  %v3295_v21 = vunpack.c.l.b16 %v1711_v10  ;;  %v1606_v18 = vadd.f32 %v1605_v11, %v1604_v27  ;;  %v3298_v22 = vadd.f32 %v1591_v54, %v1590_v16  ;;  %v3461_v55 = vld [vmem:[#allocation14_spill] sm:$0xff]  ;;  %v3462_v11 = vld [vmem:[#allocation16_spill] sm:$0xff] }
 0x3ce   : > { %v1550_v50 = vmul.f32 %v1452_v56, %v3026_v23  ;;  %v1547_v4 = vmul.f32 %v1434_v59, %v2999_v60  ;;  %v1599_v39 = vadd.f32 %v1598_v24, %v1597_v53 }
 0x3cf   : > { %v1607_v3 = vrot.slane %v1606_v18, 2 }
 0x3d0   : > { %v1638_v60 = vsel %vm1027_vm2, %v1550_v50, 0.0  ;;  %v1621_v59 = vsel %vm1027_vm2, %v1547_v4, 0.0 }
 0x3d1   : > { %v1445_v28 = vpop.permute.xlu1 %1444  ;;  %v1463_v25 = vpop.permute.xlu0 %1462  ;;  %v1608_v16 = vadd.f32 %v1607_v3, %v1606_v18 }
 0x3d2   : > { %v1552_v57 = vmul.f32 %v1463_v25, %v3021_v13  ;;  %v1549_v7 = vmul.f32 %v1445_v28, %v2993_v58 }
 0x3d4   : > { %v1647_v23 = vsel %vm1027_vm2, %v1552_v57, 0.0  ;;  %v1630_v36 = vsel %vm1027_vm2, %v1549_v7, 0.0 }
 0x3d5   : > { %v1456_v20 = vpop.permute.xlu1 %1455  ;;  %v1474_v49 = vpop.permute.xlu0 %1473  ;;  %v1631_v29 = vadd.f32 %v1630_v36, %v1629_v30 }
 0x3d6   : > { %v1551_v63 = vmul.f32 %v1456_v20, %v3039_v35  ;;  %v1620_v35 = vsel %vm1027_vm2, %v1546_v38, 0.0 }
 0x3d7   : > { %v1632_v61 = vrot.slane %v1631_v29, 4 }
 0x3d8   : > { %v1639_v13 = vsel %vm1027_vm2, %v1551_v63, 0.0 }
 0x3d9   : > { %v1467_v19 = vpop.permute.xlu1 %1466  ;;  %v1485_v0 = vpop.permute.xlu0 %1484  ;;  %v1640_v56 = vadd.f32 %v1639_v13, %v1638_v60  ;;  %v1633_v5 = vadd.f32 %v1632_v61, %v1631_v29 }
 0x3da   : > { %v1553_v44 = vmul.f32 %v1467_v19, %v3035_v31  ;;  %v1554_v31 = vmul.f32 %v1474_v49, %v2780_v40  ;;  %v1556_v42 = vmul.f32 %v1485_v0, %v2774_v34 }
 0x3db   : > { %v1641_v34 = vrot.slane %v1640_v56, 4  ;;  %v1634_v30 = vrot.slane %v1633_v5, 2 }
 0x3dc   : > { %v1648_v26 = vsel %vm1027_vm2, %v1553_v44, 0.0  ;;  %v1656_v32 = vsel %vm1027_vm2, %v1554_v31, 0.0  ;;  %v1665_v8 = vsel %vm1027_vm2, %v1556_v42, 0.0 }
 0x3dd   : > { %v1478_v48 = vpop.permute.xlu1 %1477  ;;  %v1496_v46 = vpop.permute.xlu0 %1495  ;;  %v1649_v33 = vadd.f32 %v1648_v26, %v1647_v23  ;;  %v1642_v57 = vadd.f32 %v1641_v34, %v1640_v56  ;;  %v3460_v26 = vld [vmem:[#allocation12_spill] sm:$0xff]  ;;  %v3463_v34 = vld [vmem:[#allocation13_spill] sm:$0xff]  ;;  %v1635_v61 = vadd.f32 %v1634_v30, %v1633_v5 }
 0x3de   : > { %v1555_v58 = vmul.f32 %v1478_v48, %v2803_v51  ;;  %v1622_v51 = vadd.f32 %v1621_v59, %v1620_v35  ;;  %v1558_v49 = vmul.f32 %v1496_v46, %v2858_v17 }
 0x3df   : > { %v1650_v25 = vrot.slane %v1649_v33, 4  ;;  %v1643_v23 = vrot.slane %v1642_v57, 2 }
 0x3e0   : > { %v1657_v40 = vsel %vm1027_vm2, %v1555_v58, 0.0  ;;  %v1623_v63 = vrot.slane %v1622_v51, 4  ;;  %v1674_v17 = vsel %vm1027_vm2, %v1558_v49, 0.0  ;;  %v1600_v58 = vrot.slane %v1599_v39, 1 }
 0x3e1   : > { %v1489_v28 = vpop.permute.xlu1 %1488  ;;  %v1658_v37 = vadd.f32 %v1657_v40, %v1656_v32  ;;  %v1507_v52 = vpop.permute.xlu0 %1506  ;;  %v1651_v1 = vadd.f32 %v1650_v25, %v1649_v33  ;;  %v1644_v25 = vadd.f32 %v1643_v23, %v1642_v57 }
 0x3e2   : > { %v1557_v14 = vmul.f32 %v1489_v28, %v2795_v47  ;;  %v1614_v47 = vrot.slane %v1613_v62, 4  ;;  %v1560_v6 = vmul.f32 %v1507_v52, %v2851_v12  ;;  %v1601_v3 = vadd.f32 %v1600_v58, %v1599_v39 }
 0x3e3   : > { %v1659_v20 = vrot.slane %v1658_v37, 4  ;;  %v1652_v13 = vrot.slane %v1651_v1, 2  ;;  %v1645_v57 = vrot.slane %v1644_v25, 1 }
 0x3e4   : > { %v1666_v43 = vsel %vm1027_vm2, %v1557_v14, 0.0  ;;  %v1615_v7 = vadd.f32 %v1614_v47, %v1613_v62  ;;  %v1683_v12 = vsel %vm1027_vm2, %v1560_v6, 0.0 }
 0x3e5   : > { %v1667_v38 = vadd.f32 %v1666_v43, %v1665_v8  ;;  %v1500_v9 = vpop.permute.xlu1 %1499  ;;  %v1660_v19 = vadd.f32 %v1659_v20, %v1658_v37  ;;  %v1518_v44 = vpop.permute.xlu0 %1517  ;;  %v1653_v42 = vadd.f32 %v1652_v13, %v1651_v1  ;;  %v1609_v43 = vrot.slane %v1608_v16, 1 }
 0x3e6   : > { %v1559_v2 = vmul.f32 %v1500_v9, %v2897_v41  ;;  %v1624_v41 = vadd.f32 %v1623_v63, %v1622_v51  ;;  %v1562_v60 = vmul.f32 %v1518_v44, %v3461_v55  ;;  %v1616_v10 = vrot.slane %v1615_v7, 2 }
 0x3e7   : > { %v1668_v0 = vrot.slane %v1667_v38, 4  ;;  %v1661_v31 = vrot.slane %v1660_v19, 2  ;;  %v1654_v18 = vrot.slane %v1653_v42, 1  ;;  %v1646_v23 = vadd.f32 %v1645_v57, %v1644_v25 }
 0x3e8   : > { %v1675_v50 = vsel %vm1027_vm2, %v1559_v2, 0.0  ;;  %v1625_v36 = vrot.slane %v1624_v41, 2  ;;  %v1692_v14 = vsel %vm1027_vm2, %v1562_v60, 0.0  ;;  %v1617_v24 = vadd.f32 %v1616_v10, %v1615_v7 }
 0x3e9   : > { %v1669_v35 = vadd.f32 %v1668_v0, %v1667_v38  ;;  %v1676_v4 = vadd.f32 %v1675_v50, %v1674_v17  ;;  %v1511_v45 = vpop.permute.xlu1 %1510  ;;  %v1529_v40 = vpop.permute.xlu0 %1528  ;;  %v1662_v32 = vadd.f32 %v1661_v31, %v1660_v19  ;;  %v3464_v38 = vld [vmem:[#allocation15_spill] sm:$0xff] }
 0x3ea   : > { %v1561_v27 = vmul.f32 %v1511_v45, %v3460_v26  ;;  %v1564_v8 = vmul.f32 %v1529_v40, %v3463_v34  ;;  %v1626_v47 = vadd.f32 %v1625_v36, %v1624_v41 }
 0x3eb   : > { %v1677_v48 = vrot.slane %v1676_v4, 4  ;;  %v1670_v46 = vrot.slane %v1669_v35, 2  ;;  %v1663_v63 = vrot.slane %v1662_v32, 1 }
 0x3ec   : > { %v1684_v33 = vsel %vm1027_vm2, %v1561_v27, 0.0  ;;  %v1701_v50 = vsel %vm1027_vm2, %v1564_v8, 0.0  ;;  %v1627_v7 = vrot.slane %v1626_v47, 1  ;;  %v1636_v27 = vrot.slane %v1635_v61, 1 }
 0x3ed   : > { %v1678_v53 = vadd.f32 %v1677_v48, %v1676_v4  ;;  %v1685_v59 = vadd.f32 %v1684_v33, %v1683_v12  ;;  %v1522_v56 = vpop.permute.xlu1 %1521  ;;  %v1671_v37 = vadd.f32 %v1670_v46, %v1669_v35  ;;  %v1618_v35 = vrot.slane %v1617_v24, 1 }
 0x3ee   : > { %v1563_v62 = vmul.f32 %v1522_v56, %v3462_v11  ;;  %v1655_v4 = vadd.f32 %v1654_v18, %v1653_v42  ;;  %v1664_v13 = vadd.f32 %v1663_v63, %v1662_v32  ;;  %v1712_v48 = vpack.c.bf16 %v3298_v22, %v3298_v22 }
 0x3ef   : > { %v1679_v28 = vrot.slane %v1678_v53, 2  ;;  %v1686_v51 = vrot.slane %v1685_v59, 4  ;;  %v1672_v19 = vrot.slane %v1671_v37, 1  ;;  %v1610_v46 = vadd.f32 %v1609_v43, %v1608_v16 }
 0x3f0   : > { %v1693_v52 = vsel %vm1027_vm2, %v1563_v62, 0.0  ;;  %v1619_v60 = vadd.f32 %v1618_v35, %v1617_v24  ;;  %v1719_v33 = vpack.c.bf16 %v1655_v4, %v1655_v4  ;;  %v1720_v56 = vpack.c.bf16 %v1664_v13, %v1664_v13  ;;  %v2150_v13 = vld [vmem:[%s3438_s6] ss:$0 sm:$0xff] }
 0x3f1   : > { %v1680_v54 = vadd.f32 %v1679_v28, %v1678_v53  ;;  %v1687_v29 = vadd.f32 %v1686_v51, %v1685_v59  ;;  %v1694_v20 = vadd.f32 %v1693_v52, %v1692_v14  ;;  %v1533_v49 = vpop.permute.xlu1 %1532  ;;  %v1673_v5 = vadd.f32 %v1672_v19, %v1671_v37 }
 0x3f2   : > { %v1565_v9 = vmul.f32 %v1533_v49, %v3464_v38  ;;  %v1713_v53 = vpack.c.bf16 %v1601_v3, %v1601_v3  ;;  %v1628_v59 = vadd.f32 %v1627_v7, %v1626_v47  ;;  %v1637_v36 = vadd.f32 %v1636_v27, %v1635_v61 }
 0x3f3   : > { %v1688_v1 = vrot.slane %v1687_v29, 2  ;;  %v1695_v2 = vrot.slane %v1694_v20, 4  ;;  %v1681_v17 = vrot.slane %v1680_v54, 1  ;;  %v1718_v42 = vpack.c.bf16 %v1646_v23, %v1646_v23 }
 0x3f4   : > { %v1702_v0 = vsel %vm1027_vm2, %v1565_v9, 0.0  ;;  %v1721_v40 = vpack.c.bf16 %v1673_v5, %v1673_v5  ;;  %v1761_v62 = vunpack.c.l.b16 %v1712_v48  ;;  %v1714_v30 = vpack.c.bf16 %v1610_v46, %v1610_v46 }
 0x3f5   : > { %v1689_v6 = vadd.f32 %v1688_v1, %v1687_v29  ;;  %v1696_v44 = vadd.f32 %v1695_v2, %v1694_v20  ;;  %v1703_v45 = vadd.f32 %v1702_v0, %v1701_v50  ;;  %v1682_v12 = vadd.f32 %v1681_v17, %v1680_v54 }
 0x3f6   : > { %v1715_v22 = vpack.c.bf16 %v1619_v60, %v1619_v60  ;;  %v1768_v16 = vunpack.c.l.b16 %v1719_v33  ;;  %v1762_v37 = vunpack.c.l.b16 %v1713_v53  ;;  %v1716_v14 = vpack.c.bf16 %v1628_v59, %v1628_v59 }
 0x3f7   : > { %v1690_v41 = vrot.slane %v1689_v6, 1  ;;  %v1697_v26 = vrot.slane %v1696_v44, 2  ;;  %v1704_v31 = vrot.slane %v1703_v45, 4  ;;  %v1722_v32 = vpack.c.bf16 %v1682_v12, %v1682_v12 }
 0x3f8   : > { %v1769_v52 = vunpack.c.l.b16 %v1720_v56  ;;  %v1717_v29 = vpack.c.bf16 %v1637_v36, %v1637_v36  ;;  %v1767_v34 = vunpack.c.l.b16 %v1718_v42  ;;  %v1770_v8 = vunpack.c.l.b16 %v1721_v40 }
 0x3f9   : > { %v1698_v55 = vadd.f32 %v1697_v26, %v1696_v44  ;;  %v1691_v39 = vadd.f32 %v1690_v41, %v1689_v6  ;;  %v1705_v58 = vadd.f32 %v1704_v31, %v1703_v45  ;;  %v1775_v49 = vsel %vm1306_vm4, %v3295_v21, %v3290_v15 }
 0x3fa   : > { %v1763_v43 = vunpack.c.l.b16 %v1714_v30  ;;  %v1771_v24 = vunpack.c.l.b16 %v1722_v32  ;;  %v1764_v18 = vunpack.c.l.b16 %v1715_v22  ;;  %v1782_v38 = vsel %vm1306_vm4, %v1768_v16, %v1767_v34 }
 0x3fb   : > { %v1699_v10 = vrot.slane %v1698_v55, 1  ;;  %v1706_v11 = vrot.slane %v1705_v58, 2  ;;  %v1723_v51 = vpack.c.bf16 %v1691_v39, %v1691_v39  ;;  %v1776_v63 = vsel %vm1308_vm5, %v1761_v62, %v1775_v49 }
 0x3fc   : > { %v1765_v1 = vunpack.c.l.b16 %v1716_v14  ;;  %v1783_v2 = vsel %vm1308_vm5, %v1769_v52, %v1782_v38  ;;  %v1777_v57 = vsel %vm1310_vm6, %v1762_v37, %v1776_v63  ;;  %v1766_v19 = vunpack.c.l.b16 %v1717_v29 }
 0x3fd   : > { %v1700_v28 = vadd.f32 %v1699_v10, %v1698_v55  ;;  %v1707_v25 = vadd.f32 %v1706_v11, %v1705_v58  ;;  %v1772_v9 = vunpack.c.l.b16 %v1723_v51  ;;  %v1784_v0 = vsel %vm1310_vm6, %v1770_v8, %v1783_v2 }
 0x3fe   : > { %v1778_v15 = vsel %vm1312_vm7, %v1763_v43, %v1777_v57  ;;  %v1785_v21 = vsel %vm1312_vm7, %v1771_v24, %v1784_v0 }
 0x3ff   : > { %v1724_v54 = vpack.c.bf16 %v1700_v28, %v1700_v28  ;;  %v1708_v20 = vrot.slane %v1707_v25, 1  ;;  %v1779_v6 = vsel %vm1314_vm8, %v1764_v18, %v1778_v15  ;;  %v1786_v50 = vsel %vm1314_vm8, %v1772_v9, %v1785_v21 }
 0x400   : > { %v1780_v3 = vsel %vm1316_vm9, %v1765_v1, %v1779_v6 }
 0x401   : > { %v1709_v47 = vadd.f32 %v1708_v20, %v1707_v25  ;;  %v1773_v61 = vunpack.c.l.b16 %v1724_v54  ;;  %v1781_v4 = vsel %vm1318_vm10, %v1766_v19, %v1780_v3 }
 0x403   : > { %v1725_v17 = vpack.c.bf16 %v1709_v47, %v1709_v47  ;;  %v1787_v35 = vsel %vm1316_vm9, %v1773_v61, %v1786_v50 }
 0x405   : > { %v1774_v44 = vunpack.c.l.b16 %v1725_v17 }
 0x407   : > { %v1788_v45 = vsel %vm1318_vm10, %v1774_v44, %v1787_v35 }
 0x408   : > { %v1789_v7 = vpack.c.b16 %v1788_v45, %v1781_v4 }
 0x40a   : > { %2288 = vmatmul.mubr.msk.bf16.vlgmr.msra.gmra.mrb[12].mxu1 %vm1027_vm2, %v1789_v7 }
 0x4dd   : > { %v1857_v41 = vpop.f32.mrb[12].mxu1 }
 0x4de   : > { %v1858_v26 = vadd.f32 %v2150_v13, %v1857_v41  ;;  %v2289_v27 = vpop.f32.mrb[13].mxu1 }
 0x4df   : > { %v1860_v23 = vpop.f32.mrb[14].mxu1 }
 0x4e0   : > { %v1864_v5 = vmax.f32 %v1858_v26, 0.0  ;;  %v1861_v31 = vadd.f32 %v2150_v13, %v1860_v23  ;;  %v2290_v48 = vpop.f32.mrb[15].mxu1 }
 0x4e2   : > { %v1865_v46 = vmax.f32 %v1861_v31, 0.0  ;;  %v1866_v12 = vsel %vm1027_vm2, %v1864_v5, 0.0 }
 0x4e3   : > { %1867 = vadd.xlane.f32.xlu0 %v1866_v12 }
 0x4e4   : > { %v1869_v55 = vsel %vm1027_vm2, %v1865_v46, 0.0 }
 0x4e5   : > { %1870 = vadd.xlane.f32.xlu1 %v1869_v55 }
 0x570   : > { %v1868_v60 = vpop.xlane.xlu0 %1867 }
 0x571   : > { %v1872_v33 = vmul.f32 0.0125, %v1868_v60 }
 0x572   : > { %v1871_v39 = vpop.xlane.xlu1 %1870 }
 0x573   : > { %v1874_v58 = vsub.f32 %v1864_v5, %v1872_v33  ;;  %v1873_v53 = vmul.f32 0.0125, %v1871_v39 }
 0x575   : > { %v1875_v59 = vsub.f32 %v1865_v46, %v1873_v53  ;;  %v1876_v56 = vmul.f32 %v1874_v58, %v1874_v58 }
 0x577   : > { %v1878_v10 = vsel %vm1027_vm2, %v1876_v56, 0.0  ;;  %v1877_v36 = vmul.f32 %v1875_v59, %v1875_v59 }
 0x578   : > { %1879 = vadd.xlane.f32.xlu0 %v1878_v10 }
 0x579   : > { %v1881_v42 = vsel %vm1027_vm2, %v1877_v36, 0.0 }
 0x57c   : > { %1882 = vadd.xlane.f32.xlu0 %v1881_v42 }
 0x57d   : > { %2444 = shalt.err (!%p2441_p4)
}
 0x57e   : > { %s2445_s24 = scalar_lea.hbm %s3344_s27, 2048  ;;  %s2449_s30 = scalar_lea.hbm %s3441_s9, 4096 }
 0x57f   : > { %p2446_p5 = scmp.ne.s32.totalorder %s3344_s27, %s2445_s24  ;;  %p2450_p1 = scmp.lt.u32.totalorder %s3344_s27, %s3441_s9 }
 0x580   : > { %p2451_p3 = scmp.lt.u32.totalorder %s2449_s30, %s2445_s24  ;;  %p2453_p11 = scmp.lt.u32.totalorder %s2445_s24, %s3344_s27 }
 0x581   : > { %p2447_p7 = pnand %p2446_p5, %p3465_p12 }
 0x582   : > { %p2452_p6 = por %p2451_p3, %p2450_p1 }
 0x583   : > { %p2448_p9 = pneg %p2447_p7 }
 0x584   : > { %p2454_p13 = por %p2453_p11, %p2452_p6 }
 0x586   : > { %p2455_p8 = pnand %p2454_p13, %p2448_p9 }
 0x588   : > { %2458 = shalt.err (!%p2455_p8)
}
 0x589   : > { %s2537_s22 = smov 64   ;;  %s2538_s21 = smov 4   ;;  %v2157_v16 = vld [vmem:[%s3439_s7] ss:$0 sm:$0xff] }
 0x58a   : > { %2305 = dma.vmem_to_hbm [thread:$0]  (%p3465_p12), %s3347_s29, 2048, %s3344_s27, %s1913_s28, %s2537_s22, %s2537_s22, %s2538_s21  }
 0x58b   : > { %s2075_s23 = sshll.u32 %s2701_s18, 4  ;;  %v2158_v25 = vld [vmem:[%s3440_s8] ss:$0 sm:$0xff]  ;;  %s2204_s27 = sshll.u32 %s2618_s17, 8 }
 0x58c   : > { %s405_s29 = scalar_lea.vmem [#allocation6], %s2075_s23  ;;  %s3385_s21 = scalar_lea.hbm %s3442_s10, %s2204_s27 }
 0x58d   : > { %s1948_s28 = sshll.u32 %s405_s29, 4  ;;  %s1918_s24 = scalar_lea.sflag [#allocation7], %s2701_s18  ;;  %s3387_s28 = int_to_ptr.vmem [resolvable:$true] %s1948_s28 }
 0x58e   : > { %s2459_s17 = scalar_lea.vmem %s3387_s28, 256  ;;  %s2539_s11 = smov [#allocation6]  }
 0x58f   : > { %p2460_p10 = scmp.ne.s32.totalorder %s3387_s28, %s2459_s17  ;;  %s2463_s23 = sshll.u32 %s2539_s11, 4  ;;  %s2464_s23 = int_to_ptr.vmem [resolvable:$false] %s2463_s23 }
 0x590   : > { %s2465_s30 = scalar_lea.vmem %s2464_s23, 512  ;;  %p2466_p4 = scmp.lt.s32.totalorder %s3387_s28, %s2464_s23 }
 0x591   : > { %p2461_p0 = pnand %p2460_p10, %p3465_p12  ;;  %p2467_p5 = scmp.lt.s32.totalorder %s2465_s30, %s2459_s17 }
 0x593   : > { %p2462_p2 = pneg %p2461_p0  ;;  %p2468_p7 = por %p2467_p5, %p2466_p4 }
 0x595   : > { %p2469_p9 = pnand %p2468_p7, %p2462_p2 }
 0x605   : > { %v1880_v40 = vpop.xlane.xlu0 %1879 }
 0x606   : > { %v1884_v11 = vmul.f32 0.0125, %v1880_v40 }
 0x608   : > { %v1886_v62 = vadd.f32 1e-05, %v1884_v11 }
 0x609   : > { %v1883_v30 = vpop.xlane.xlu0 %1882 }
 0x60a   : > { %2397 = vrsqrt.f32 %v1886_v62  ;;  %v1885_v32 = vmul.f32 0.0125, %v1883_v30 }
 0x60c   : > { %v1887_v28 = vadd.f32 1e-05, %v1885_v32 }
 0x60e   : > { %2399 = vrsqrt.f32 %v1887_v28 }
 0x614   : > { %v2398_v22 = vpop.eup %2397 }
 0x615   : > { %v1890_v51 = vmul.f32 %v2398_v22, %v1874_v58 }
 0x617   : > { %v1899_v37 = vmul.f32 %v2157_v16, %v1890_v51 }
 0x618   : > { %v2400_v14 = vpop.eup %2399 }
 0x619   : > { %v1908_v52 = vadd.f32 %v2158_v25, %v1899_v37  ;;  %v1891_v54 = vmul.f32 %v2400_v14, %v1875_v59 }
 0x61b   : > { %v1900_v29 = vmul.f32 %v2157_v16, %v1891_v54  ;;  %1910 = vst.msk [vmem:[%s405_s29] sm:$0xff] %vm1027_vm2, %v1908_v52 }
 0x61d   : > { %v1909_v34 = vadd.f32 %v2158_v25, %v1900_v29 }
 0x61f   : > { %1911 = vst.msk [vmem:[%s405_s29 + $0x8] sm:$0xff] %vm1027_vm2, %v1909_v34 }
 0x620   : > { %2472 = shalt.err (!%p2469_p9)
}
 0x621   : > { %s2473_s12 = scalar_lea.hbm %s3385_s21, 256  ;;  %s2477_s20 = scalar_lea.hbm %s3442_s10, 512 }
 0x622   : > { %p2474_p1 = scmp.ne.s32.totalorder %s3385_s21, %s2473_s12  ;;  %p2478_p11 = scmp.lt.u32.totalorder %s3385_s21, %s3442_s10 }
 0x623   : > { %p2479_p13 = scmp.lt.u32.totalorder %s2477_s20, %s2473_s12  ;;  %p2481_p10 = scmp.lt.u32.totalorder %s2473_s12, %s3385_s21 }
 0x624   : > { %p2475_p3 = pnand %p2474_p1, %p3465_p12 }
 0x625   : > { %p2480_p8 = por %p2479_p13, %p2478_p11 }
 0x626   : > { %p2476_p6 = pneg %p2475_p3 }
 0x627   : > { %p2482_p0 = por %p2481_p10, %p2480_p8 }
 0x629   : > { %p2483_p2 = pnand %p2482_p0, %p2476_p6 }
 0x62b   : > { %2486 = shalt.err (!%p2483_p2)
}
 0x62c   : > { %s2540_s17 = smov 128   ;;  %s2541_s23 = smov 8  }
 0x62d   : > { %2306 = dma.vmem_to_hbm [thread:$0]  (%p3465_p12), %s3387_s28, 256, %s3385_s21, %s1918_s24, %s2540_s17, %s2540_s17, %s2541_s23  }
 0x62e PF: > { %s1963_s30 = sand.u32 1, %s2517_s13   ;;  %p3466_p4 = scmp.ne.s32.totalorder %s3453_s26, 0 }
 0x62f   : > { %p3467_p5 = scmp.ge.s32.totalorder %s2529_s16, 2  ;;  %s1964_s12 = scalar_lea.sflag [#allocation4], %s1963_s30 }
 0x631   : > { %p2314_p7 = pnand %p3467_p5, %p3466_p4 }
 0x633   : > { %2508 = dma.done.wait (!%p2314_p7), %s1964_s12, 2048  }
 0x634   : > { %2510 = vsyncadd (!%p2314_p7), %s1964_s12, 4294965248  ;;  %s1973_s27 = scalar_lea.sflag [#allocation7], %s1963_s30 }
 0x635   : > { %2512 = dma.done.wait (!%p2314_p7), %s1973_s27, 256  }
 0x636   : > { %2514 = vsyncadd (!%p2314_p7), %s1973_s27, 4294967040  ;;  %s3468_s25 = sld [smem:[#allocation11_spill]]  ;;  %p27_p12 = scmp.ge.s32.totalorder %s2622_s19, 4  }
 0x637   : > { %s3469_s13 = smov %s2521_s14  ;;  %s3470_s14 = smov %s2525_s15 }
 0x638   : > { %s3472_s16 = smov %s2622_s19  ;;  %29 = sbr.rel (!%p27_p12) target bundleno = 7 (0x7), region = 121 }
 0x63c   : > { %s3471_s15 = smov %s3468_s25 }
 0x63f   :  { %1978 = vsyncpa [#allocation3], 1 }
 0x640   :  { %1980 = vsyncpa [#allocation3 + $0x1], 1 }
 0x641   :  { %1981 = vsyncpa [#allocation4], 1 }
 0x642   :  { %1983 = vsyncpa [#allocation4 + $0x1], 1 }
 0x643   :  { %1984 = vsyncpa [#allocation7], 1 }
 0x644   :  { %1986 = vsyncpa [#allocation7 + $0x1], 1 }

</bundles_post_ra>
